<compile_context>
chip_gen: v7x
topology: tpu7x:2x2x1
jax: 0.10.0
libtpu: 0.0.40
codegen_flags: <defaults>
</compile_context>

<pallas_src>
import functools

import jax
import jax.numpy as jnp
from jax import lax
from jax.experimental import pallas as pl
from jax.experimental.pallas import tpu as pltpu


def _round_up(x, m):
    return ((x + m - 1) // m) * m


def _pick_time_chunk(S, Bt, Hp, Op, budget_bytes=32 << 20):
    """VMEM-aware timesteps-per-grid-step.

    The streamed per-timestep bytes are the x_proj block (Bt, 4Hp) f32 and the
    out block (Bt, Op) f32, both double-buffered. Prefer a divisor of S close
    to the cap (no padding); otherwise return the cap and let the caller pad S.
    """
    per_t = (Bt * 4 * Hp + Bt * Op) * 4 * 2
    cap = max(1, min(S, budget_bytes // max(per_t, 1), 32))
    best = 1
    for d in range(cap, 0, -1):
        if S % d == 0:
            best = d
            break
    if best * 2 > cap:          # divisor close enough to the cap -> no padding
        return best
    return cap                  # caller pads S up to a multiple of cap


def _vmem_limit_bytes(T, Bt, Hp, Op):
    b = 0
    b += T * Bt * 4 * Hp * 4 * 2        # x_proj blocks, f32, double-buffered
    b += T * Bt * Op * 4 * 2            # out blocks, f32, double-buffered
    b += Hp * 4 * Hp * 2                # W_hh, bf16, single-buffered
    b += Hp * Op * 2 + Op * 4           # W_dec (bf16) + b_dec
    b += 4 * Bt * Hp * 4                # h0/c0 inputs (double-buffered)
    b += 4 * Bt * Hp * 4                # hN/cN outputs
    b += 2 * Bt * Hp * 4                # h/c scratch
    return int(min(64 << 20, max(8 << 20, 2 * b)))


# ---------------------------------------------------------------------------
# Fused LSTM recurrence + decoder kernel
#   gates (per step) = x_proj[t] + h @ W_hh^T     (gate blocks: i | f | o | g)
#   out[t]           = h_new @ W_dec^T + b_dec
# ---------------------------------------------------------------------------
def _lstm_decode_kernel(xproj_ref, whh_ref, h0_ref, c0_ref, wdec_ref, bdec_ref,
                        out_ref, hN_ref, cN_ref, h_sc, c_sc,
                        *, hp, t_chunk, seq_len, needs_mask):
    t_blk = pl.program_id(1)

    @pl.when(t_blk == 0)
    def _():
        h_sc[...] = h0_ref[...]
        c_sc[...] = c0_ref[...]

    def body(t, carry):
        h = h_sc[...]                                   # (Bt, Hp) f32
        c = c_sc[...]
        # Recurrent matmul in bf16 on the MXU, f32 accumulate; x_proj is f32.
        gates = xproj_ref[t] + jnp.dot(
            h.astype(jnp.bfloat16), whh_ref[...],
            preferred_element_type=jnp.float32)          # (Bt, 4Hp) f32
        ifo = jax.nn.sigmoid(gates[:, :3 * hp])          # one sigmoid: i|f|o
        g_g = jnp.tanh(gates[:, 3 * hp:])                # one tanh:    g
        i_g = ifo[:, :hp]
        f_g = ifo[:, hp:2 * hp]
        o_g = ifo[:, 2 * hp:]
        c_new = f_g * c + i_g * g_g
        h_new = o_g * jnp.tanh(c_new)
        if needs_mask:
            valid = (t_blk * t_chunk + t) < seq_len
            h_new = jnp.where(valid, h_new, h)
            c_new = jnp.where(valid, c_new, c)
        h_sc[...] = h_new
        c_sc[...] = c_new
        # Fused decoder: MXU is otherwise idle during the recurrence.
        out_ref[t] = (jnp.dot(h_new.astype(jnp.bfloat16), wdec_ref[...],
                              preferred_element_type=jnp.float32)
                      + bdec_ref[...]).astype(out_ref.dtype)
        return carry

    lax.fori_loop(0, t_chunk, body, 0, unroll=True)

    @pl.when(t_blk == pl.num_programs(1) - 1)
    def _():
        hN_ref[...] = h_sc[...]
        cN_ref[...] = c_sc[...]


# ---------------------------------------------------------------------------
# Forward: table gather -> pad -> fused Pallas kernel -> unpad
# ---------------------------------------------------------------------------
@functools.partial(jax.jit, static_argnames=("hidden_size", "output_size"))
def char_rnn_forward(tokens, hidden, prepared, *, hidden_size, output_size):
    """tokens: (S, B) int32, hidden: (h0, c0) each (1, B, H) f32."""
    table = prepared["proj_table"]     # (V, 4Hp) f32, gates (i,f,o,g), padded
    w_hh = prepared["w_hh"]            # (Hp, 4Hp) bf16
    w_dec = prepared["w_dec"]          # (Hp, Op)  bf16
    b_dec = prepared["b_dec"]          # (1, Op)   f32

    S, B = tokens.shape
    H, O = hidden_size, output_size
    Hp = w_hh.shape[0]
    Op = w_dec.shape[1]

    Bp = _round_up(B, 8)                        # sublane tile
    Bt = Bp // 2 if Bp % 16 == 0 else Bp        # batch tile (2nd TC on v7x)
    T = _pick_time_chunk(S, Bt, Hp, Op)
    Sp = _round_up(S, T)
    needs_mask = Sp != S

    h0, c0 = hidden
    h0p = jnp.pad(h0[0], ((0, Bp - B), (0, Hp - H)))        # (Bp, Hp)
    c0p = jnp.pad(c0[0], ((0, Bp - B), (0, Hp - H)))

    # Phase-1 matmul eliminated: input projection == per-token table gather.
    x_proj = jnp.take(table, tokens, axis=0)                # (S, B, 4Hp) f32
    x_proj = jnp.pad(x_proj, ((0, Sp - S), (0, Bp - B), (0, 0)))

    const = lambda b, s: (0, 0)
    out_pad, hN, cN = pl.pallas_call(
        functools.partial(_lstm_decode_kernel, hp=Hp, t_chunk=T,
                          seq_len=S, needs_mask=needs_mask),
        out_shape=(
            jax.ShapeDtypeStruct((Sp, Bp, Op), jnp.float32),
            jax.ShapeDtypeStruct((Bp, Hp), jnp.float32),
            jax.ShapeDtypeStruct((Bp, Hp), jnp.float32),
        ),
        grid_spec=pltpu.PrefetchScalarGridSpec(
            num_scalar_prefetch=0,
            grid=(Bp // Bt, Sp // T),
            in_specs=[
                pl.BlockSpec((T, Bt, 4 * Hp), lambda b, s: (s, b, 0)),  # x_proj
                pl.BlockSpec((Hp, 4 * Hp), const,
                             pipeline_mode=pl.Buffered(1)),             # W_hh^T
                pl.BlockSpec((Bt, Hp), lambda b, s: (b, 0)),            # h0
                pl.BlockSpec((Bt, Hp), lambda b, s: (b, 0)),            # c0
                pl.BlockSpec((Hp, Op), const,
                             pipeline_mode=pl.Buffered(1)),             # W_dec^T
                pl.BlockSpec((1, Op), const,
                             pipeline_mode=pl.Buffered(1)),             # b_dec
            ],
            out_specs=[
                pl.BlockSpec((T, Bt, Op), lambda b, s: (s, b, 0)),      # logits
                pl.BlockSpec((Bt, Hp), lambda b, s: (b, 0)),            # final h
                pl.BlockSpec((Bt, Hp), lambda b, s: (b, 0)),            # final c
            ],
            scratch_shapes=[
                pltpu.VMEM((Bt, Hp), jnp.float32),                      # h carry
                pltpu.VMEM((Bt, Hp), jnp.float32),                      # c carry
            ],
        ),
        compiler_params=pltpu.CompilerParams(
            dimension_semantics=("parallel", "arbitrary"),
            vmem_limit_bytes=_vmem_limit_bytes(T, Bt, Hp, Op),
        ),
    )(x_proj, w_hh, h0p, c0p, w_dec, b_dec)

    out = out_pad[:S, :B, :O]
    hN = hN[:B, :H]
    cN = cN[:B, :H]
    return out, (hN[None], cN[None])


# ---------------------------------------------------------------------------
# Parameters: raw (PyTorch layout) + one-time prep (hoisted out of forward)
# ---------------------------------------------------------------------------
def init_params(key, input_size, hidden_size, output_size):
    ks = jax.random.split(key, 7)
    scale = 1.0 / jnp.sqrt(hidden_size)
    return {
        "embedding": jax.random.normal(
            ks[0], (input_size, hidden_size), jnp.float32),
        "w_ih": jax.random.uniform(
            ks[1], (4 * hidden_size, hidden_size), jnp.float32, -scale, scale),
        "w_hh": jax.random.uniform(
            ks[2], (4 * hidden_size, hidden_size), jnp.float32, -scale, scale),
        "b_ih": jax.random.uniform(
            ks[3], (4 * hidden_size,), jnp.float32, -scale, scale),
        "b_hh": jax.random.uniform(
            ks[4], (4 * hidden_size,), jnp.float32, -scale, scale),
        "w_dec": jax.random.uniform(
            ks[5], (output_size, hidden_size), jnp.float32, -scale, scale),
        "b_dec": jax.random.uniform(
            ks[6], (output_size,), jnp.float32, -scale, scale),
    }


def prepare_params(raw):
    """One-time weight prep: vocab proj table, gate reorder (i,f,o,g),
    hardware-tile padding, bf16 casts for MXU operands."""
    emb = raw["embedding"]                      # (V, H)
    w_ih = raw["w_ih"]                          # (4H, H), gates (i, f, g, o)
    w_hh = raw["w_hh"]                          # (4H, H)
    b_gate = raw["b_ih"] + raw["b_hh"]          # (4H,)
    w_dec = raw["w_dec"]                        # (O, H)
    b_dec = raw["b_dec"]                        # (O,)

    V, H = emb.shape
    O = w_dec.shape[0]
    Hp = _round_up(H, 128)
    Op = _round_up(O, 128)
    perm = (0, 1, 3, 2)                         # (i,f,g,o) -> (i,f,o,g)

    # Per-vocab input-projection table (kept f32; feeds the f32 gate math).
    table = emb @ w_ih.T + b_gate[None, :]                      # (V, 4H)
    table = table.reshape(V, 4, H)[:, perm, :]
    table = jnp.pad(table, ((0, 0), (0, 0), (0, Hp - H)))
    table = table.reshape(V, 4 * Hp).astype(jnp.float32)

    whh = w_hh.T.reshape(H, 4, H)[:, perm, :]
    whh = jnp.pad(whh, ((0, Hp - H), (0, 0), (0, Hp - H)))
    whh = whh.reshape(Hp, 4 * Hp).astype(jnp.bfloat16)

    wdec = jnp.pad(w_dec.T, ((0, Hp - H), (0, Op - O))).astype(jnp.bfloat16)
    bdec = jnp.pad(b_dec[None, :], ((0, 0), (0, Op - O))).astype(jnp.float32)

    return {"proj_table": table, "w_hh": whh, "w_dec": wdec, "b_dec": bdec}


# ---------------------------------------------------------------------------
# Pure-JAX f32 reference (mirrors torch Embedding -> LSTM -> Linear)
# ---------------------------------------------------------------------------
def _reference_forward(tokens, hidden, raw):
    emb = jnp.take(raw["embedding"], tokens, axis=0)            # (S, B, H)
    h, c = hidden[0][0], hidden[1][0]
    H = h.shape[-1]
    w_ih_t = raw["w_ih"].T
    w_hh_t = raw["w_hh"].T
    b = (raw["b_ih"] + raw["b_hh"])[None, :]
    w_dec_t = raw["w_dec"].T
    b_dec = raw["b_dec"][None, :]

    def step(carry, x):
        h, c = carry
        gates = x @ w_ih_t + h @ w_hh_t + b
        i = jax.nn.sigmoid(gates[:, :H])
        f = jax.nn.sigmoid(gates[:, H:2 * H])
        g = jnp.tanh(gates[:, 2 * H:3 * H])
        o = jax.nn.sigmoid(gates[:, 3 * H:])
        c = f * c + i * g
        h = o * jnp.tanh(c)
        return (h, c), h @ w_dec_t + b_dec

    (h, c), out = lax.scan(step, (h, c), emb)
    return out, (h[None], c[None])


if __name__ == "__main__":
    # Small shapes consistent with the module: vocab=16, hidden=32, output=16,
    # seq=8, batch=2, n_layer=1 (lstm).
    V, H, O, S, B = 16, 32, 16, 8, 2

    key = jax.random.PRNGKey(0)
    pkey, tkey = jax.random.split(key)
    raw = init_params(pkey, V, H, O)
    prepared = prepare_params(raw)

    tokens = jax.random.randint(tkey, (S, B), 0, V, dtype=jnp.int32)
    hidden0 = (jnp.zeros((1, B, H), jnp.float32),
               jnp.zeros((1, B, H), jnp.float32))   # init_hidden for lstm

    out, (hN, cN) = char_rnn_forward(tokens, hidden0, prepared,
                                     hidden_size=H, output_size=O)
    jax.block_until_ready((out, hN, cN))

    ref_out, (ref_h, ref_c) = _reference_forward(tokens, hidden0, raw)
    assert out.shape == (S, B, O)
    assert hN.shape == (1, B, H) and cN.shape == (1, B, H)
    # bf16 MXU operands (W_hh / W_dec / h) with f32 accumulate -> looser
    # tolerance than the pure-f32 version.
    assert jnp.allclose(out, ref_out, atol=5e-2, rtol=5e-2)
    assert jnp.allclose(hN, ref_h, atol=5e-2, rtol=5e-2)
    assert jnp.allclose(cN, ref_c, atol=5e-2, rtol=5e-2)

    print("KERNEL_OK")
</pallas_src>

<mosaic_0001>
module attributes {stable_mosaic.version = 11 : i64} {
  func.func @_lstm_decode_kernel(%arg0: i32, %arg1: i32, %arg2: memref<8x8x512xf32, #tpu.memory_space<vmem>>, %arg3: memref<128x512xbf16, #tpu.memory_space<vmem>>, %arg4: memref<8x128xf32, #tpu.memory_space<vmem>>, %arg5: memref<8x128xf32, #tpu.memory_space<vmem>>, %arg6: memref<128x128xbf16, #tpu.memory_space<vmem>>, %arg7: memref<1x128xf32, #tpu.memory_space<vmem>>, %arg8: memref<8x8x128xf32, #tpu.memory_space<vmem>>, %arg9: memref<8x128xf32, #tpu.memory_space<vmem>>, %arg10: memref<8x128xf32, #tpu.memory_space<vmem>>, %arg11: memref<8x128xf32, #tpu.memory_space<vmem>>, %arg12: memref<8x128xf32, #tpu.memory_space<vmem>>) attributes {dimension_semantics = [#tpu.dimension_semantics<parallel>, #tpu.dimension_semantics<arbitrary>], iteration_bounds = array<i64: 1, 1>, scalar_prefetch = 0 : i64, scratch_operands = 2 : i64, tpu.core_type = #tpu.core_type<tc>, window_params = [{transform_indices = @transform_0, window_bounds = array<i64: 8, 8, 512>}, {pipeline_mode = #tpu.pipeline_mode<synchronous>, transform_indices = @transform_1, window_bounds = array<i64: 128, 512>}, {transform_indices = @transform_2, window_bounds = array<i64: 8, 128>}, {transform_indices = @transform_3, window_bounds = array<i64: 8, 128>}, {pipeline_mode = #tpu.pipeline_mode<synchronous>, transform_indices = @transform_4, window_bounds = array<i64: 128, 128>}, {pipeline_mode = #tpu.pipeline_mode<synchronous>, transform_indices = @transform_5, window_bounds = array<i64: 1, 128>}, {transform_indices = @transform_6, window_bounds = array<i64: 8, 8, 128>}, {transform_indices = @transform_7, window_bounds = array<i64: 8, 128>}, {transform_indices = @transform_8, window_bounds = array<i64: 8, 128>}]} {
    %c0_i32 = arith.constant 0 : i32
    %0 = arith.cmpi eq, %arg1, %c0_i32 : i32
    %1 = arith.extui %0 : i1 to i32
    %c0_i32_0 = arith.constant 0 : i32
    %2 = arith.cmpi ne, %1, %c0_i32_0 : i32
    scf.if %2 {
      %c0_170 = arith.constant 0 : index
      %c0_171 = arith.constant 0 : index
      %302 = vector.load %arg4[%c0_170, %c0_171] : memref<8x128xf32, #tpu.memory_space<vmem>>, vector<8x128xf32>
      %c0_172 = arith.constant 0 : index
      %c0_173 = arith.constant 0 : index
      %303 = vector.load %arg11[%c0_172, %c0_173] : memref<8x128xf32, #tpu.memory_space<vmem>>, vector<8x128xf32>
      tpu.vector_store %arg11[%c0_172, %c0_173], %302 {strides = array<i32>} : memref<8x128xf32, #tpu.memory_space<vmem>>, vector<8x128xf32>,
      %c0_174 = arith.constant 0 : index
      %c0_175 = arith.constant 0 : index
      %304 = vector.load %arg5[%c0_174, %c0_175] : memref<8x128xf32, #tpu.memory_space<vmem>>, vector<8x128xf32>
      %c0_176 = arith.constant 0 : index
      %c0_177 = arith.constant 0 : index
      %305 = vector.load %arg12[%c0_176, %c0_177] : memref<8x128xf32, #tpu.memory_space<vmem>>, vector<8x128xf32>
      tpu.vector_store %arg12[%c0_176, %c0_177], %304 {strides = array<i32>} : memref<8x128xf32, #tpu.memory_space<vmem>>, vector<8x128xf32>,
    } else {
    }
    %c0_i32_1 = arith.constant 0 : i32
    %c0 = arith.constant 0 : index
    %c0_2 = arith.constant 0 : index
    %3 = vector.load %arg11[%c0, %c0_2] : memref<8x128xf32, #tpu.memory_space<vmem>>, vector<8x128xf32>
    %c0_3 = arith.constant 0 : index
    %c0_4 = arith.constant 0 : index
    %4 = vector.load %arg12[%c0_3, %c0_4] : memref<8x128xf32, #tpu.memory_space<vmem>>, vector<8x128xf32>
    %5 = arith.index_cast %c0_i32_1 : i32 to index
    %c0_5 = arith.constant 0 : index
    %c0_6 = arith.constant 0 : index
    %6 = vector.load %arg2[%5, %c0_5, %c0_6] : memref<8x8x512xf32, #tpu.memory_space<vmem>>, vector<1x8x512xf32>
    %7 = vector.shape_cast %6 : vector<1x8x512xf32> to vector<8x512xf32>
    %8 = arith.truncf %3 : vector<8x128xf32> to vector<8x128xbf16>
    %c0_7 = arith.constant 0 : index
    %c0_8 = arith.constant 0 : index
    %9 = vector.load %arg3[%c0_7, %c0_8] : memref<128x512xbf16, #tpu.memory_space<vmem>>, vector<128x512xbf16>
    %cst = arith.constant dense<0.000000e+00> : vector<8x512xf32>
    %10 = tpu.matmul %8, %9, %cst {dimension_numbers = #tpu.dot_dimension_numbers<[1], [0], [0], [1], [0, 0, 1, 1], [], []>} : vector<8x128xbf16>, vector<128x512xbf16>, vector<8x512xf32> -> vector<8x512xf32>
    %11 = arith.addf %7, %10 : vector<8x512xf32>
    %12 = vector.extract_strided_slice %11 {offsets = [0, 0], sizes = [8, 384], strides = [1, 1]} : vector<8x512xf32> to vector<8x384xf32>
    %13 = arith.negf %12 : vector<8x384xf32>
    %14 = math.exp %13 : vector<8x384xf32>
    %cst_9 = arith.constant 1.000000e+00 : f32
    %15 = vector.broadcast %cst_9 : f32 to vector<8x384xf32>
    %16 = arith.addf %15, %14 : vector<8x384xf32>
    %17 = arith.divf %15, %16 : vector<8x384xf32>
    %18 = vector.extract_strided_slice %11 {offsets = [0, 384], sizes = [8, 128], strides = [1, 1]} : vector<8x512xf32> to vector<8x128xf32>
    %19 = math.tanh %18 : vector<8x128xf32>
    %20 = vector.extract_strided_slice %17 {offsets = [0, 0], sizes = [8, 128], strides = [1, 1]} : vector<8x384xf32> to vector<8x128xf32>
    %21 = vector.extract_strided_slice %17 {offsets = [0, 128], sizes = [8, 128], strides = [1, 1]} : vector<8x384xf32> to vector<8x128xf32>
    %22 = vector.extract_strided_slice %17 {offsets = [0, 256], sizes = [8, 128], strides = [1, 1]} : vector<8x384xf32> to vector<8x128xf32>
    %23 = arith.mulf %21, %4 : vector<8x128xf32>
    %24 = arith.mulf %20, %19 : vector<8x128xf32>
    %25 = arith.addf %23, %24 : vector<8x128xf32>
    %26 = math.tanh %25 : vector<8x128xf32>
    %27 = arith.mulf %22, %26 : vector<8x128xf32>
    %c0_10 = arith.constant 0 : index
    %c0_11 = arith.constant 0 : index
    %28 = vector.load %arg11[%c0_10, %c0_11] : memref<8x128xf32, #tpu.memory_space<vmem>>, vector<8x128xf32>
    tpu.vector_store %arg11[%c0_10, %c0_11], %27 {strides = array<i32>} : memref<8x128xf32, #tpu.memory_space<vmem>>, vector<8x128xf32>,
    %c0_12 = arith.constant 0 : index
    %c0_13 = arith.constant 0 : index
    %29 = vector.load %arg12[%c0_12, %c0_13] : memref<8x128xf32, #tpu.memory_space<vmem>>, vector<8x128xf32>
    tpu.vector_store %arg12[%c0_12, %c0_13], %25 {strides = array<i32>} : memref<8x128xf32, #tpu.memory_space<vmem>>, vector<8x128xf32>,
    %30 = arith.truncf %27 : vector<8x128xf32> to vector<8x128xbf16>
    %c0_14 = arith.constant 0 : index
    %c0_15 = arith.constant 0 : index
    %31 = vector.load %arg6[%c0_14, %c0_15] : memref<128x128xbf16, #tpu.memory_space<vmem>>, vector<128x128xbf16>
    %cst_16 = arith.constant dense<0.000000e+00> : vector<8x128xf32>
    %32 = tpu.matmul %30, %31, %cst_16 {dimension_numbers = #tpu.dot_dimension_numbers<[1], [0], [0], [1], [0, 0, 1, 1], [], []>} : vector<8x128xbf16>, vector<128x128xbf16>, vector<8x128xf32> -> vector<8x128xf32>
    %c0_17 = arith.constant 0 : index
    %c0_18 = arith.constant 0 : index
    %33 = vector.load %arg7[%c0_17, %c0_18] : memref<1x128xf32, #tpu.memory_space<vmem>>, vector<1x128xf32>
    %34 = vector.broadcast %33 : vector<1x128xf32> to vector<8x128xf32>
    %35 = arith.addf %32, %34 : vector<8x128xf32>
    %36 = arith.index_cast %c0_i32_1 : i32 to index
    %c0_19 = arith.constant 0 : index
    %c0_20 = arith.constant 0 : index
    %37 = vector.load %arg8[%36, %c0_19, %c0_20] : memref<8x8x128xf32, #tpu.memory_space<vmem>>, vector<1x8x128xf32>
    %38 = vector.shape_cast %37 : vector<1x8x128xf32> to vector<8x128xf32>
    %39 = vector.shape_cast %35 : vector<8x128xf32> to vector<1x8x128xf32>
    tpu.vector_store %arg8[%36, %c0_19, %c0_20], %39 {strides = array<i32>} : memref<8x8x128xf32, #tpu.memory_space<vmem>>, vector<1x8x128xf32>,
    %c1_i32 = arith.constant 1 : i32
    %c0_21 = arith.constant 0 : index
    %c0_22 = arith.constant 0 : index
    %40 = vector.load %arg11[%c0_21, %c0_22] : memref<8x128xf32, #tpu.memory_space<vmem>>, vector<8x128xf32>
    %c0_23 = arith.constant 0 : index
    %c0_24 = arith.constant 0 : index
    %41 = vector.load %arg12[%c0_23, %c0_24] : memref<8x128xf32, #tpu.memory_space<vmem>>, vector<8x128xf32>
    %42 = arith.index_cast %c1_i32 : i32 to index
    %c0_25 = arith.constant 0 : index
    %c0_26 = arith.constant 0 : index
    %43 = vector.load %arg2[%42, %c0_25, %c0_26] : memref<8x8x512xf32, #tpu.memory_space<vmem>>, vector<1x8x512xf32>
    %44 = vector.shape_cast %43 : vector<1x8x512xf32> to vector<8x512xf32>
    %45 = arith.truncf %40 : vector<8x128xf32> to vector<8x128xbf16>
    %c0_27 = arith.constant 0 : index
    %c0_28 = arith.constant 0 : index
    %46 = vector.load %arg3[%c0_27, %c0_28] : memref<128x512xbf16, #tpu.memory_space<vmem>>, vector<128x512xbf16>
    %cst_29 = arith.constant dense<0.000000e+00> : vector<8x512xf32>
    %47 = tpu.matmul %45, %46, %cst_29 {dimension_numbers = #tpu.dot_dimension_numbers<[1], [0], [0], [1], [0, 0, 1, 1], [], []>} : vector<8x128xbf16>, vector<128x512xbf16>, vector<8x512xf32> -> vector<8x512xf32>
    %48 = arith.addf %44, %47 : vector<8x512xf32>
    %49 = vector.extract_strided_slice %48 {offsets = [0, 0], sizes = [8, 384], strides = [1, 1]} : vector<8x512xf32> to vector<8x384xf32>
    %50 = arith.negf %49 : vector<8x384xf32>
    %51 = math.exp %50 : vector<8x384xf32>
    %cst_30 = arith.constant 1.000000e+00 : f32
    %52 = vector.broadcast %cst_30 : f32 to vector<8x384xf32>
    %53 = arith.addf %52, %51 : vector<8x384xf32>
    %54 = arith.divf %52, %53 : vector<8x384xf32>
    %55 = vector.extract_strided_slice %48 {offsets = [0, 384], sizes = [8, 128], strides = [1, 1]} : vector<8x512xf32> to vector<8x128xf32>
    %56 = math.tanh %55 : vector<8x128xf32>
    %57 = vector.extract_strided_slice %54 {offsets = [0, 0], sizes = [8, 128], strides = [1, 1]} : vector<8x384xf32> to vector<8x128xf32>
    %58 = vector.extract_strided_slice %54 {offsets = [0, 128], sizes = [8, 128], strides = [1, 1]} : vector<8x384xf32> to vector<8x128xf32>
    %59 = vector.extract_strided_slice %54 {offsets = [0, 256], sizes = [8, 128], strides = [1, 1]} : vector<8x384xf32> to vector<8x128xf32>
    %60 = arith.mulf %58, %41 : vector<8x128xf32>
    %61 = arith.mulf %57, %56 : vector<8x128xf32>
    %62 = arith.addf %60, %61 : vector<8x128xf32>
    %63 = math.tanh %62 : vector<8x128xf32>
    %64 = arith.mulf %59, %63 : vector<8x128xf32>
    %c0_31 = arith.constant 0 : index
    %c0_32 = arith.constant 0 : index
    %65 = vector.load %arg11[%c0_31, %c0_32] : memref<8x128xf32, #tpu.memory_space<vmem>>, vector<8x128xf32>
    tpu.vector_store %arg11[%c0_31, %c0_32], %64 {strides = array<i32>} : memref<8x128xf32, #tpu.memory_space<vmem>>, vector<8x128xf32>,
    %c0_33 = arith.constant 0 : index
    %c0_34 = arith.constant 0 : index
    %66 = vector.load %arg12[%c0_33, %c0_34] : memref<8x128xf32, #tpu.memory_space<vmem>>, vector<8x128xf32>
    tpu.vector_store %arg12[%c0_33, %c0_34], %62 {strides = array<i32>} : memref<8x128xf32, #tpu.memory_space<vmem>>, vector<8x128xf32>,
    %67 = arith.truncf %64 : vector<8x128xf32> to vector<8x128xbf16>
    %c0_35 = arith.constant 0 : index
    %c0_36 = arith.constant 0 : index
    %68 = vector.load %arg6[%c0_35, %c0_36] : memref<128x128xbf16, #tpu.memory_space<vmem>>, vector<128x128xbf16>
    %cst_37 = arith.constant dense<0.000000e+00> : vector<8x128xf32>
    %69 = tpu.matmul %67, %68, %cst_37 {dimension_numbers = #tpu.dot_dimension_numbers<[1], [0], [0], [1], [0, 0, 1, 1], [], []>} : vector<8x128xbf16>, vector<128x128xbf16>, vector<8x128xf32> -> vector<8x128xf32>
    %c0_38 = arith.constant 0 : index
    %c0_39 = arith.constant 0 : index
    %70 = vector.load %arg7[%c0_38, %c0_39] : memref<1x128xf32, #tpu.memory_space<vmem>>, vector<1x128xf32>
    %71 = vector.broadcast %70 : vector<1x128xf32> to vector<8x128xf32>
    %72 = arith.addf %69, %71 : vector<8x128xf32>
    %73 = arith.index_cast %c1_i32 : i32 to index
    %c0_40 = arith.constant 0 : index
    %c0_41 = arith.constant 0 : index
    %74 = vector.load %arg8[%73, %c0_40, %c0_41] : memref<8x8x128xf32, #tpu.memory_space<vmem>>, vector<1x8x128xf32>
    %75 = vector.shape_cast %74 : vector<1x8x128xf32> to vector<8x128xf32>
    %76 = vector.shape_cast %72 : vector<8x128xf32> to vector<1x8x128xf32>
    tpu.vector_store %arg8[%73, %c0_40, %c0_41], %76 {strides = array<i32>} : memref<8x8x128xf32, #tpu.memory_space<vmem>>, vector<1x8x128xf32>,
    %c2_i32 = arith.constant 2 : i32
    %c0_42 = arith.constant 0 : index
    %c0_43 = arith.constant 0 : index
    %77 = vector.load %arg11[%c0_42, %c0_43] : memref<8x128xf32, #tpu.memory_space<vmem>>, vector<8x128xf32>
    %c0_44 = arith.constant 0 : index
    %c0_45 = arith.constant 0 : index
    %78 = vector.load %arg12[%c0_44, %c0_45] : memref<8x128xf32, #tpu.memory_space<vmem>>, vector<8x128xf32>
    %79 = arith.index_cast %c2_i32 : i32 to index
    %c0_46 = arith.constant 0 : index
    %c0_47 = arith.constant 0 : index
    %80 = vector.load %arg2[%79, %c0_46, %c0_47] : memref<8x8x512xf32, #tpu.memory_space<vmem>>, vector<1x8x512xf32>
    %81 = vector.shape_cast %80 : vector<1x8x512xf32> to vector<8x512xf32>
    %82 = arith.truncf %77 : vector<8x128xf32> to vector<8x128xbf16>
    %c0_48 = arith.constant 0 : index
    %c0_49 = arith.constant 0 : index
    %83 = vector.load %arg3[%c0_48, %c0_49] : memref<128x512xbf16, #tpu.memory_space<vmem>>, vector<128x512xbf16>
    %cst_50 = arith.constant dense<0.000000e+00> : vector<8x512xf32>
    %84 = tpu.matmul %82, %83, %cst_50 {dimension_numbers = #tpu.dot_dimension_numbers<[1], [0], [0], [1], [0, 0, 1, 1], [], []>} : vector<8x128xbf16>, vector<128x512xbf16>, vector<8x512xf32> -> vector<8x512xf32>
    %85 = arith.addf %81, %84 : vector<8x512xf32>
    %86 = vector.extract_strided_slice %85 {offsets = [0, 0], sizes = [8, 384], strides = [1, 1]} : vector<8x512xf32> to vector<8x384xf32>
    %87 = arith.negf %86 : vector<8x384xf32>
    %88 = math.exp %87 : vector<8x384xf32>
    %cst_51 = arith.constant 1.000000e+00 : f32
    %89 = vector.broadcast %cst_51 : f32 to vector<8x384xf32>
    %90 = arith.addf %89, %88 : vector<8x384xf32>
    %91 = arith.divf %89, %90 : vector<8x384xf32>
    %92 = vector.extract_strided_slice %85 {offsets = [0, 384], sizes = [8, 128], strides = [1, 1]} : vector<8x512xf32> to vector<8x128xf32>
    %93 = math.tanh %92 : vector<8x128xf32>
    %94 = vector.extract_strided_slice %91 {offsets = [0, 0], sizes = [8, 128], strides = [1, 1]} : vector<8x384xf32> to vector<8x128xf32>
    %95 = vector.extract_strided_slice %91 {offsets = [0, 128], sizes = [8, 128], strides = [1, 1]} : vector<8x384xf32> to vector<8x128xf32>
    %96 = vector.extract_strided_slice %91 {offsets = [0, 256], sizes = [8, 128], strides = [1, 1]} : vector<8x384xf32> to vector<8x128xf32>
    %97 = arith.mulf %95, %78 : vector<8x128xf32>
    %98 = arith.mulf %94, %93 : vector<8x128xf32>
    %99 = arith.addf %97, %98 : vector<8x128xf32>
    %100 = math.tanh %99 : vector<8x128xf32>
    %101 = arith.mulf %96, %100 : vector<8x128xf32>
    %c0_52 = arith.constant 0 : index
    %c0_53 = arith.constant 0 : index
    %102 = vector.load %arg11[%c0_52, %c0_53] : memref<8x128xf32, #tpu.memory_space<vmem>>, vector<8x128xf32>
    tpu.vector_store %arg11[%c0_52, %c0_53], %101 {strides = array<i32>} : memref<8x128xf32, #tpu.memory_space<vmem>>, vector<8x128xf32>,
    %c0_54 = arith.constant 0 : index
    %c0_55 = arith.constant 0 : index
    %103 = vector.load %arg12[%c0_54, %c0_55] : memref<8x128xf32, #tpu.memory_space<vmem>>, vector<8x128xf32>
    tpu.vector_store %arg12[%c0_54, %c0_55], %99 {strides = array<i32>} : memref<8x128xf32, #tpu.memory_space<vmem>>, vector<8x128xf32>,
    %104 = arith.truncf %101 : vector<8x128xf32> to vector<8x128xbf16>
    %c0_56 = arith.constant 0 : index
    %c0_57 = arith.constant 0 : index
    %105 = vector.load %arg6[%c0_56, %c0_57] : memref<128x128xbf16, #tpu.memory_space<vmem>>, vector<128x128xbf16>
    %cst_58 = arith.constant dense<0.000000e+00> : vector<8x128xf32>
    %106 = tpu.matmul %104, %105, %cst_58 {dimension_numbers = #tpu.dot_dimension_numbers<[1], [0], [0], [1], [0, 0, 1, 1], [], []>} : vector<8x128xbf16>, vector<128x128xbf16>, vector<8x128xf32> -> vector<8x128xf32>
    %c0_59 = arith.constant 0 : index
    %c0_60 = arith.constant 0 : index
    %107 = vector.load %arg7[%c0_59, %c0_60] : memref<1x128xf32, #tpu.memory_space<vmem>>, vector<1x128xf32>
    %108 = vector.broadcast %107 : vector<1x128xf32> to vector<8x128xf32>
    %109 = arith.addf %106, %108 : vector<8x128xf32>
    %110 = arith.index_cast %c2_i32 : i32 to index
    %c0_61 = arith.constant 0 : index
    %c0_62 = arith.constant 0 : index
    %111 = vector.load %arg8[%110, %c0_61, %c0_62] : memref<8x8x128xf32, #tpu.memory_space<vmem>>, vector<1x8x128xf32>
    %112 = vector.shape_cast %111 : vector<1x8x128xf32> to vector<8x128xf32>
    %113 = vector.shape_cast %109 : vector<8x128xf32> to vector<1x8x128xf32>
    tpu.vector_store %arg8[%110, %c0_61, %c0_62], %113 {strides = array<i32>} : memref<8x8x128xf32, #tpu.memory_space<vmem>>, vector<1x8x128xf32>,
    %c3_i32 = arith.constant 3 : i32
    %c0_63 = arith.constant 0 : index
    %c0_64 = arith.constant 0 : index
    %114 = vector.load %arg11[%c0_63, %c0_64] : memref<8x128xf32, #tpu.memory_space<vmem>>, vector<8x128xf32>
    %c0_65 = arith.constant 0 : index
    %c0_66 = arith.constant 0 : index
    %115 = vector.load %arg12[%c0_65, %c0_66] : memref<8x128xf32, #tpu.memory_space<vmem>>, vector<8x128xf32>
    %116 = arith.index_cast %c3_i32 : i32 to index
    %c0_67 = arith.constant 0 : index
    %c0_68 = arith.constant 0 : index
    %117 = vector.load %arg2[%116, %c0_67, %c0_68] : memref<8x8x512xf32, #tpu.memory_space<vmem>>, vector<1x8x512xf32>
    %118 = vector.shape_cast %117 : vector<1x8x512xf32> to vector<8x512xf32>
    %119 = arith.truncf %114 : vector<8x128xf32> to vector<8x128xbf16>
    %c0_69 = arith.constant 0 : index
    %c0_70 = arith.constant 0 : index
    %120 = vector.load %arg3[%c0_69, %c0_70] : memref<128x512xbf16, #tpu.memory_space<vmem>>, vector<128x512xbf16>
    %cst_71 = arith.constant dense<0.000000e+00> : vector<8x512xf32>
    %121 = tpu.matmul %119, %120, %cst_71 {dimension_numbers = #tpu.dot_dimension_numbers<[1], [0], [0], [1], [0, 0, 1, 1], [], []>} : vector<8x128xbf16>, vector<128x512xbf16>, vector<8x512xf32> -> vector<8x512xf32>
    %122 = arith.addf %118, %121 : vector<8x512xf32>
    %123 = vector.extract_strided_slice %122 {offsets = [0, 0], sizes = [8, 384], strides = [1, 1]} : vector<8x512xf32> to vector<8x384xf32>
    %124 = arith.negf %123 : vector<8x384xf32>
    %125 = math.exp %124 : vector<8x384xf32>
    %cst_72 = arith.constant 1.000000e+00 : f32
    %126 = vector.broadcast %cst_72 : f32 to vector<8x384xf32>
    %127 = arith.addf %126, %125 : vector<8x384xf32>
    %128 = arith.divf %126, %127 : vector<8x384xf32>
    %129 = vector.extract_strided_slice %122 {offsets = [0, 384], sizes = [8, 128], strides = [1, 1]} : vector<8x512xf32> to vector<8x128xf32>
    %130 = math.tanh %129 : vector<8x128xf32>
    %131 = vector.extract_strided_slice %128 {offsets = [0, 0], sizes = [8, 128], strides = [1, 1]} : vector<8x384xf32> to vector<8x128xf32>
    %132 = vector.extract_strided_slice %128 {offsets = [0, 128], sizes = [8, 128], strides = [1, 1]} : vector<8x384xf32> to vector<8x128xf32>
    %133 = vector.extract_strided_slice %128 {offsets = [0, 256], sizes = [8, 128], strides = [1, 1]} : vector<8x384xf32> to vector<8x128xf32>
    %134 = arith.mulf %132, %115 : vector<8x128xf32>
    %135 = arith.mulf %131, %130 : vector<8x128xf32>
    %136 = arith.addf %134, %135 : vector<8x128xf32>
    %137 = math.tanh %136 : vector<8x128xf32>
    %138 = arith.mulf %133, %137 : vector<8x128xf32>
    %c0_73 = arith.constant 0 : index
    %c0_74 = arith.constant 0 : index
    %139 = vector.load %arg11[%c0_73, %c0_74] : memref<8x128xf32, #tpu.memory_space<vmem>>, vector<8x128xf32>
    tpu.vector_store %arg11[%c0_73, %c0_74], %138 {strides = array<i32>} : memref<8x128xf32, #tpu.memory_space<vmem>>, vector<8x128xf32>,
    %c0_75 = arith.constant 0 : index
    %c0_76 = arith.constant 0 : index
    %140 = vector.load %arg12[%c0_75, %c0_76] : memref<8x128xf32, #tpu.memory_space<vmem>>, vector<8x128xf32>
    tpu.vector_store %arg12[%c0_75, %c0_76], %136 {strides = array<i32>} : memref<8x128xf32, #tpu.memory_space<vmem>>, vector<8x128xf32>,
    %141 = arith.truncf %138 : vector<8x128xf32> to vector<8x128xbf16>
    %c0_77 = arith.constant 0 : index
    %c0_78 = arith.constant 0 : index
    %142 = vector.load %arg6[%c0_77, %c0_78] : memref<128x128xbf16, #tpu.memory_space<vmem>>, vector<128x128xbf16>
    %cst_79 = arith.constant dense<0.000000e+00> : vector<8x128xf32>
    %143 = tpu.matmul %141, %142, %cst_79 {dimension_numbers = #tpu.dot_dimension_numbers<[1], [0], [0], [1], [0, 0, 1, 1], [], []>} : vector<8x128xbf16>, vector<128x128xbf16>, vector<8x128xf32> -> vector<8x128xf32>
    %c0_80 = arith.constant 0 : index
    %c0_81 = arith.constant 0 : index
    %144 = vector.load %arg7[%c0_80, %c0_81] : memref<1x128xf32, #tpu.memory_space<vmem>>, vector<1x128xf32>
    %145 = vector.broadcast %144 : vector<1x128xf32> to vector<8x128xf32>
    %146 = arith.addf %143, %145 : vector<8x128xf32>
    %147 = arith.index_cast %c3_i32 : i32 to index
    %c0_82 = arith.constant 0 : index
    %c0_83 = arith.constant 0 : index
    %148 = vector.load %arg8[%147, %c0_82, %c0_83] : memref<8x8x128xf32, #tpu.memory_space<vmem>>, vector<1x8x128xf32>
    %149 = vector.shape_cast %148 : vector<1x8x128xf32> to vector<8x128xf32>
    %150 = vector.shape_cast %146 : vector<8x128xf32> to vector<1x8x128xf32>
    tpu.vector_store %arg8[%147, %c0_82, %c0_83], %150 {strides = array<i32>} : memref<8x8x128xf32, #tpu.memory_space<vmem>>, vector<1x8x128xf32>,
    %c4_i32 = arith.constant 4 : i32
    %c0_84 = arith.constant 0 : index
    %c0_85 = arith.constant 0 : index
    %151 = vector.load %arg11[%c0_84, %c0_85] : memref<8x128xf32, #tpu.memory_space<vmem>>, vector<8x128xf32>
    %c0_86 = arith.constant 0 : index
    %c0_87 = arith.constant 0 : index
    %152 = vector.load %arg12[%c0_86, %c0_87] : memref<8x128xf32, #tpu.memory_space<vmem>>, vector<8x128xf32>
    %153 = arith.index_cast %c4_i32 : i32 to index
    %c0_88 = arith.constant 0 : index
    %c0_89 = arith.constant 0 : index
    %154 = vector.load %arg2[%153, %c0_88, %c0_89] : memref<8x8x512xf32, #tpu.memory_space<vmem>>, vector<1x8x512xf32>
    %155 = vector.shape_cast %154 : vector<1x8x512xf32> to vector<8x512xf32>
    %156 = arith.truncf %151 : vector<8x128xf32> to vector<8x128xbf16>
    %c0_90 = arith.constant 0 : index
    %c0_91 = arith.constant 0 : index
    %157 = vector.load %arg3[%c0_90, %c0_91] : memref<128x512xbf16, #tpu.memory_space<vmem>>, vector<128x512xbf16>
    %cst_92 = arith.constant dense<0.000000e+00> : vector<8x512xf32>
    %158 = tpu.matmul %156, %157, %cst_92 {dimension_numbers = #tpu.dot_dimension_numbers<[1], [0], [0], [1], [0, 0, 1, 1], [], []>} : vector<8x128xbf16>, vector<128x512xbf16>, vector<8x512xf32> -> vector<8x512xf32>
    %159 = arith.addf %155, %158 : vector<8x512xf32>
    %160 = vector.extract_strided_slice %159 {offsets = [0, 0], sizes = [8, 384], strides = [1, 1]} : vector<8x512xf32> to vector<8x384xf32>
    %161 = arith.negf %160 : vector<8x384xf32>
    %162 = math.exp %161 : vector<8x384xf32>
    %cst_93 = arith.constant 1.000000e+00 : f32
    %163 = vector.broadcast %cst_93 : f32 to vector<8x384xf32>
    %164 = arith.addf %163, %162 : vector<8x384xf32>
    %165 = arith.divf %163, %164 : vector<8x384xf32>
    %166 = vector.extract_strided_slice %159 {offsets = [0, 384], sizes = [8, 128], strides = [1, 1]} : vector<8x512xf32> to vector<8x128xf32>
    %167 = math.tanh %166 : vector<8x128xf32>
    %168 = vector.extract_strided_slice %165 {offsets = [0, 0], sizes = [8, 128], strides = [1, 1]} : vector<8x384xf32> to vector<8x128xf32>
    %169 = vector.extract_strided_slice %165 {offsets = [0, 128], sizes = [8, 128], strides = [1, 1]} : vector<8x384xf32> to vector<8x128xf32>
    %170 = vector.extract_strided_slice %165 {offsets = [0, 256], sizes = [8, 128], strides = [1, 1]} : vector<8x384xf32> to vector<8x128xf32>
    %171 = arith.mulf %169, %152 : vector<8x128xf32>
    %172 = arith.mulf %168, %167 : vector<8x128xf32>
    %173 = arith.addf %171, %172 : vector<8x128xf32>
    %174 = math.tanh %173 : vector<8x128xf32>
    %175 = arith.mulf %170, %174 : vector<8x128xf32>
    %c0_94 = arith.constant 0 : index
    %c0_95 = arith.constant 0 : index
    %176 = vector.load %arg11[%c0_94, %c0_95] : memref<8x128xf32, #tpu.memory_space<vmem>>, vector<8x128xf32>
    tpu.vector_store %arg11[%c0_94, %c0_95], %175 {strides = array<i32>} : memref<8x128xf32, #tpu.memory_space<vmem>>, vector<8x128xf32>,
    %c0_96 = arith.constant 0 : index
    %c0_97 = arith.constant 0 : index
    %177 = vector.load %arg12[%c0_96, %c0_97] : memref<8x128xf32, #tpu.memory_space<vmem>>, vector<8x128xf32>
    tpu.vector_store %arg12[%c0_96, %c0_97], %173 {strides = array<i32>} : memref<8x128xf32, #tpu.memory_space<vmem>>, vector<8x128xf32>,
    %178 = arith.truncf %175 : vector<8x128xf32> to vector<8x128xbf16>
    %c0_98 = arith.constant 0 : index
    %c0_99 = arith.constant 0 : index
    %179 = vector.load %arg6[%c0_98, %c0_99] : memref<128x128xbf16, #tpu.memory_space<vmem>>, vector<128x128xbf16>
    %cst_100 = arith.constant dense<0.000000e+00> : vector<8x128xf32>
    %180 = tpu.matmul %178, %179, %cst_100 {dimension_numbers = #tpu.dot_dimension_numbers<[1], [0], [0], [1], [0, 0, 1, 1], [], []>} : vector<8x128xbf16>, vector<128x128xbf16>, vector<8x128xf32> -> vector<8x128xf32>
    %c0_101 = arith.constant 0 : index
    %c0_102 = arith.constant 0 : index
    %181 = vector.load %arg7[%c0_101, %c0_102] : memref<1x128xf32, #tpu.memory_space<vmem>>, vector<1x128xf32>
    %182 = vector.broadcast %181 : vector<1x128xf32> to vector<8x128xf32>
    %183 = arith.addf %180, %182 : vector<8x128xf32>
    %184 = arith.index_cast %c4_i32 : i32 to index
    %c0_103 = arith.constant 0 : index
    %c0_104 = arith.constant 0 : index
    %185 = vector.load %arg8[%184, %c0_103, %c0_104] : memref<8x8x128xf32, #tpu.memory_space<vmem>>, vector<1x8x128xf32>
    %186 = vector.shape_cast %185 : vector<1x8x128xf32> to vector<8x128xf32>
    %187 = vector.shape_cast %183 : vector<8x128xf32> to vector<1x8x128xf32>
    tpu.vector_store %arg8[%184, %c0_103, %c0_104], %187 {strides = array<i32>} : memref<8x8x128xf32, #tpu.memory_space<vmem>>, vector<1x8x128xf32>,
    %c5_i32 = arith.constant 5 : i32
    %c0_105 = arith.constant 0 : index
    %c0_106 = arith.constant 0 : index
    %188 = vector.load %arg11[%c0_105, %c0_106] : memref<8x128xf32, #tpu.memory_space<vmem>>, vector<8x128xf32>
    %c0_107 = arith.constant 0 : index
    %c0_108 = arith.constant 0 : index
    %189 = vector.load %arg12[%c0_107, %c0_108] : memref<8x128xf32, #tpu.memory_space<vmem>>, vector<8x128xf32>
    %190 = arith.index_cast %c5_i32 : i32 to index
    %c0_109 = arith.constant 0 : index
    %c0_110 = arith.constant 0 : index
    %191 = vector.load %arg2[%190, %c0_109, %c0_110] : memref<8x8x512xf32, #tpu.memory_space<vmem>>, vector<1x8x512xf32>
    %192 = vector.shape_cast %191 : vector<1x8x512xf32> to vector<8x512xf32>
    %193 = arith.truncf %188 : vector<8x128xf32> to vector<8x128xbf16>
    %c0_111 = arith.constant 0 : index
    %c0_112 = arith.constant 0 : index
    %194 = vector.load %arg3[%c0_111, %c0_112] : memref<128x512xbf16, #tpu.memory_space<vmem>>, vector<128x512xbf16>
    %cst_113 = arith.constant dense<0.000000e+00> : vector<8x512xf32>
    %195 = tpu.matmul %193, %194, %cst_113 {dimension_numbers = #tpu.dot_dimension_numbers<[1], [0], [0], [1], [0, 0, 1, 1], [], []>} : vector<8x128xbf16>, vector<128x512xbf16>, vector<8x512xf32> -> vector<8x512xf32>
    %196 = arith.addf %192, %195 : vector<8x512xf32>
    %197 = vector.extract_strided_slice %196 {offsets = [0, 0], sizes = [8, 384], strides = [1, 1]} : vector<8x512xf32> to vector<8x384xf32>
    %198 = arith.negf %197 : vector<8x384xf32>
    %199 = math.exp %198 : vector<8x384xf32>
    %cst_114 = arith.constant 1.000000e+00 : f32
    %200 = vector.broadcast %cst_114 : f32 to vector<8x384xf32>
    %201 = arith.addf %200, %199 : vector<8x384xf32>
    %202 = arith.divf %200, %201 : vector<8x384xf32>
    %203 = vector.extract_strided_slice %196 {offsets = [0, 384], sizes = [8, 128], strides = [1, 1]} : vector<8x512xf32> to vector<8x128xf32>
    %204 = math.tanh %203 : vector<8x128xf32>
    %205 = vector.extract_strided_slice %202 {offsets = [0, 0], sizes = [8, 128], strides = [1, 1]} : vector<8x384xf32> to vector<8x128xf32>
    %206 = vector.extract_strided_slice %202 {offsets = [0, 128], sizes = [8, 128], strides = [1, 1]} : vector<8x384xf32> to vector<8x128xf32>
    %207 = vector.extract_strided_slice %202 {offsets = [0, 256], sizes = [8, 128], strides = [1, 1]} : vector<8x384xf32> to vector<8x128xf32>
    %208 = arith.mulf %206, %189 : vector<8x128xf32>
    %209 = arith.mulf %205, %204 : vector<8x128xf32>
    %210 = arith.addf %208, %209 : vector<8x128xf32>
    %211 = math.tanh %210 : vector<8x128xf32>
    %212 = arith.mulf %207, %211 : vector<8x128xf32>
    %c0_115 = arith.constant 0 : index
    %c0_116 = arith.constant 0 : index
    %213 = vector.load %arg11[%c0_115, %c0_116] : memref<8x128xf32, #tpu.memory_space<vmem>>, vector<8x128xf32>
    tpu.vector_store %arg11[%c0_115, %c0_116], %212 {strides = array<i32>} : memref<8x128xf32, #tpu.memory_space<vmem>>, vector<8x128xf32>,
    %c0_117 = arith.constant 0 : index
    %c0_118 = arith.constant 0 : index
    %214 = vector.load %arg12[%c0_117, %c0_118] : memref<8x128xf32, #tpu.memory_space<vmem>>, vector<8x128xf32>
    tpu.vector_store %arg12[%c0_117, %c0_118], %210 {strides = array<i32>} : memref<8x128xf32, #tpu.memory_space<vmem>>, vector<8x128xf32>,
    %215 = arith.truncf %212 : vector<8x128xf32> to vector<8x128xbf16>
    %c0_119 = arith.constant 0 : index
    %c0_120 = arith.constant 0 : index
    %216 = vector.load %arg6[%c0_119, %c0_120] : memref<128x128xbf16, #tpu.memory_space<vmem>>, vector<128x128xbf16>
    %cst_121 = arith.constant dense<0.000000e+00> : vector<8x128xf32>
    %217 = tpu.matmul %215, %216, %cst_121 {dimension_numbers = #tpu.dot_dimension_numbers<[1], [0], [0], [1], [0, 0, 1, 1], [], []>} : vector<8x128xbf16>, vector<128x128xbf16>, vector<8x128xf32> -> vector<8x128xf32>
    %c0_122 = arith.constant 0 : index
    %c0_123 = arith.constant 0 : index
    %218 = vector.load %arg7[%c0_122, %c0_123] : memref<1x128xf32, #tpu.memory_space<vmem>>, vector<1x128xf32>
    %219 = vector.broadcast %218 : vector<1x128xf32> to vector<8x128xf32>
    %220 = arith.addf %217, %219 : vector<8x128xf32>
    %221 = arith.index_cast %c5_i32 : i32 to index
    %c0_124 = arith.constant 0 : index
    %c0_125 = arith.constant 0 : index
    %222 = vector.load %arg8[%221, %c0_124, %c0_125] : memref<8x8x128xf32, #tpu.memory_space<vmem>>, vector<1x8x128xf32>
    %223 = vector.shape_cast %222 : vector<1x8x128xf32> to vector<8x128xf32>
    %224 = vector.shape_cast %220 : vector<8x128xf32> to vector<1x8x128xf32>
    tpu.vector_store %arg8[%221, %c0_124, %c0_125], %224 {strides = array<i32>} : memref<8x8x128xf32, #tpu.memory_space<vmem>>, vector<1x8x128xf32>,
    %c6_i32 = arith.constant 6 : i32
    %c0_126 = arith.constant 0 : index
    %c0_127 = arith.constant 0 : index
    %225 = vector.load %arg11[%c0_126, %c0_127] : memref<8x128xf32, #tpu.memory_space<vmem>>, vector<8x128xf32>
    %c0_128 = arith.constant 0 : index
    %c0_129 = arith.constant 0 : index
    %226 = vector.load %arg12[%c0_128, %c0_129] : memref<8x128xf32, #tpu.memory_space<vmem>>, vector<8x128xf32>
    %227 = arith.index_cast %c6_i32 : i32 to index
    %c0_130 = arith.constant 0 : index
    %c0_131 = arith.constant 0 : index
    %228 = vector.load %arg2[%227, %c0_130, %c0_131] : memref<8x8x512xf32, #tpu.memory_space<vmem>>, vector<1x8x512xf32>
    %229 = vector.shape_cast %228 : vector<1x8x512xf32> to vector<8x512xf32>
    %230 = arith.truncf %225 : vector<8x128xf32> to vector<8x128xbf16>
    %c0_132 = arith.constant 0 : index
    %c0_133 = arith.constant 0 : index
    %231 = vector.load %arg3[%c0_132, %c0_133] : memref<128x512xbf16, #tpu.memory_space<vmem>>, vector<128x512xbf16>
    %cst_134 = arith.constant dense<0.000000e+00> : vector<8x512xf32>
    %232 = tpu.matmul %230, %231, %cst_134 {dimension_numbers = #tpu.dot_dimension_numbers<[1], [0], [0], [1], [0, 0, 1, 1], [], []>} : vector<8x128xbf16>, vector<128x512xbf16>, vector<8x512xf32> -> vector<8x512xf32>
    %233 = arith.addf %229, %232 : vector<8x512xf32>
    %234 = vector.extract_strided_slice %233 {offsets = [0, 0], sizes = [8, 384], strides = [1, 1]} : vector<8x512xf32> to vector<8x384xf32>
    %235 = arith.negf %234 : vector<8x384xf32>
    %236 = math.exp %235 : vector<8x384xf32>
    %cst_135 = arith.constant 1.000000e+00 : f32
    %237 = vector.broadcast %cst_135 : f32 to vector<8x384xf32>
    %238 = arith.addf %237, %236 : vector<8x384xf32>
    %239 = arith.divf %237, %238 : vector<8x384xf32>
    %240 = vector.extract_strided_slice %233 {offsets = [0, 384], sizes = [8, 128], strides = [1, 1]} : vector<8x512xf32> to vector<8x128xf32>
    %241 = math.tanh %240 : vector<8x128xf32>
    %242 = vector.extract_strided_slice %239 {offsets = [0, 0], sizes = [8, 128], strides = [1, 1]} : vector<8x384xf32> to vector<8x128xf32>
    %243 = vector.extract_strided_slice %239 {offsets = [0, 128], sizes = [8, 128], strides = [1, 1]} : vector<8x384xf32> to vector<8x128xf32>
    %244 = vector.extract_strided_slice %239 {offsets = [0, 256], sizes = [8, 128], strides = [1, 1]} : vector<8x384xf32> to vector<8x128xf32>
    %245 = arith.mulf %243, %226 : vector<8x128xf32>
    %246 = arith.mulf %242, %241 : vector<8x128xf32>
    %247 = arith.addf %245, %246 : vector<8x128xf32>
    %248 = math.tanh %247 : vector<8x128xf32>
    %249 = arith.mulf %244, %248 : vector<8x128xf32>
    %c0_136 = arith.constant 0 : index
    %c0_137 = arith.constant 0 : index
    %250 = vector.load %arg11[%c0_136, %c0_137] : memref<8x128xf32, #tpu.memory_space<vmem>>, vector<8x128xf32>
    tpu.vector_store %arg11[%c0_136, %c0_137], %249 {strides = array<i32>} : memref<8x128xf32, #tpu.memory_space<vmem>>, vector<8x128xf32>,
    %c0_138 = arith.constant 0 : index
    %c0_139 = arith.constant 0 : index
    %251 = vector.load %arg12[%c0_138, %c0_139] : memref<8x128xf32, #tpu.memory_space<vmem>>, vector<8x128xf32>
    tpu.vector_store %arg12[%c0_138, %c0_139], %247 {strides = array<i32>} : memref<8x128xf32, #tpu.memory_space<vmem>>, vector<8x128xf32>,
    %252 = arith.truncf %249 : vector<8x128xf32> to vector<8x128xbf16>
    %c0_140 = arith.constant 0 : index
    %c0_141 = arith.constant 0 : index
    %253 = vector.load %arg6[%c0_140, %c0_141] : memref<128x128xbf16, #tpu.memory_space<vmem>>, vector<128x128xbf16>
    %cst_142 = arith.constant dense<0.000000e+00> : vector<8x128xf32>
    %254 = tpu.matmul %252, %253, %cst_142 {dimension_numbers = #tpu.dot_dimension_numbers<[1], [0], [0], [1], [0, 0, 1, 1], [], []>} : vector<8x128xbf16>, vector<128x128xbf16>, vector<8x128xf32> -> vector<8x128xf32>
    %c0_143 = arith.constant 0 : index
    %c0_144 = arith.constant 0 : index
    %255 = vector.load %arg7[%c0_143, %c0_144] : memref<1x128xf32, #tpu.memory_space<vmem>>, vector<1x128xf32>
    %256 = vector.broadcast %255 : vector<1x128xf32> to vector<8x128xf32>
    %257 = arith.addf %254, %256 : vector<8x128xf32>
    %258 = arith.index_cast %c6_i32 : i32 to index
    %c0_145 = arith.constant 0 : index
    %c0_146 = arith.constant 0 : index
    %259 = vector.load %arg8[%258, %c0_145, %c0_146] : memref<8x8x128xf32, #tpu.memory_space<vmem>>, vector<1x8x128xf32>
    %260 = vector.shape_cast %259 : vector<1x8x128xf32> to vector<8x128xf32>
    %261 = vector.shape_cast %257 : vector<8x128xf32> to vector<1x8x128xf32>
    tpu.vector_store %arg8[%258, %c0_145, %c0_146], %261 {strides = array<i32>} : memref<8x8x128xf32, #tpu.memory_space<vmem>>, vector<1x8x128xf32>,
    %c7_i32 = arith.constant 7 : i32
    %c0_147 = arith.constant 0 : index
    %c0_148 = arith.constant 0 : index
    %262 = vector.load %arg11[%c0_147, %c0_148] : memref<8x128xf32, #tpu.memory_space<vmem>>, vector<8x128xf32>
    %c0_149 = arith.constant 0 : index
    %c0_150 = arith.constant 0 : index
    %263 = vector.load %arg12[%c0_149, %c0_150] : memref<8x128xf32, #tpu.memory_space<vmem>>, vector<8x128xf32>
    %264 = arith.index_cast %c7_i32 : i32 to index
    %c0_151 = arith.constant 0 : index
    %c0_152 = arith.constant 0 : index
    %265 = vector.load %arg2[%264, %c0_151, %c0_152] : memref<8x8x512xf32, #tpu.memory_space<vmem>>, vector<1x8x512xf32>
    %266 = vector.shape_cast %265 : vector<1x8x512xf32> to vector<8x512xf32>
    %267 = arith.truncf %262 : vector<8x128xf32> to vector<8x128xbf16>
    %c0_153 = arith.constant 0 : index
    %c0_154 = arith.constant 0 : index
    %268 = vector.load %arg3[%c0_153, %c0_154] : memref<128x512xbf16, #tpu.memory_space<vmem>>, vector<128x512xbf16>
    %cst_155 = arith.constant dense<0.000000e+00> : vector<8x512xf32>
    %269 = tpu.matmul %267, %268, %cst_155 {dimension_numbers = #tpu.dot_dimension_numbers<[1], [0], [0], [1], [0, 0, 1, 1], [], []>} : vector<8x128xbf16>, vector<128x512xbf16>, vector<8x512xf32> -> vector<8x512xf32>
    %270 = arith.addf %266, %269 : vector<8x512xf32>
    %271 = vector.extract_strided_slice %270 {offsets = [0, 0], sizes = [8, 384], strides = [1, 1]} : vector<8x512xf32> to vector<8x384xf32>
    %272 = arith.negf %271 : vector<8x384xf32>
    %273 = math.exp %272 : vector<8x384xf32>
    %cst_156 = arith.constant 1.000000e+00 : f32
    %274 = vector.broadcast %cst_156 : f32 to vector<8x384xf32>
    %275 = arith.addf %274, %273 : vector<8x384xf32>
    %276 = arith.divf %274, %275 : vector<8x384xf32>
    %277 = vector.extract_strided_slice %270 {offsets = [0, 384], sizes = [8, 128], strides = [1, 1]} : vector<8x512xf32> to vector<8x128xf32>
    %278 = math.tanh %277 : vector<8x128xf32>
    %279 = vector.extract_strided_slice %276 {offsets = [0, 0], sizes = [8, 128], strides = [1, 1]} : vector<8x384xf32> to vector<8x128xf32>
    %280 = vector.extract_strided_slice %276 {offsets = [0, 128], sizes = [8, 128], strides = [1, 1]} : vector<8x384xf32> to vector<8x128xf32>
    %281 = vector.extract_strided_slice %276 {offsets = [0, 256], sizes = [8, 128], strides = [1, 1]} : vector<8x384xf32> to vector<8x128xf32>
    %282 = arith.mulf %280, %263 : vector<8x128xf32>
    %283 = arith.mulf %279, %278 : vector<8x128xf32>
    %284 = arith.addf %282, %283 : vector<8x128xf32>
    %285 = math.tanh %284 : vector<8x128xf32>
    %286 = arith.mulf %281, %285 : vector<8x128xf32>
    %c0_157 = arith.constant 0 : index
    %c0_158 = arith.constant 0 : index
    %287 = vector.load %arg11[%c0_157, %c0_158] : memref<8x128xf32, #tpu.memory_space<vmem>>, vector<8x128xf32>
    tpu.vector_store %arg11[%c0_157, %c0_158], %286 {strides = array<i32>} : memref<8x128xf32, #tpu.memory_space<vmem>>, vector<8x128xf32>,
    %c0_159 = arith.constant 0 : index
    %c0_160 = arith.constant 0 : index
    %288 = vector.load %arg12[%c0_159, %c0_160] : memref<8x128xf32, #tpu.memory_space<vmem>>, vector<8x128xf32>
    tpu.vector_store %arg12[%c0_159, %c0_160], %284 {strides = array<i32>} : memref<8x128xf32, #tpu.memory_space<vmem>>, vector<8x128xf32>,
    %289 = arith.truncf %286 : vector<8x128xf32> to vector<8x128xbf16>
    %c0_161 = arith.constant 0 : index
    %c0_162 = arith.constant 0 : index
    %290 = vector.load %arg6[%c0_161, %c0_162] : memref<128x128xbf16, #tpu.memory_space<vmem>>, vector<128x128xbf16>
    %cst_163 = arith.constant dense<0.000000e+00> : vector<8x128xf32>
    %291 = tpu.matmul %289, %290, %cst_163 {dimension_numbers = #tpu.dot_dimension_numbers<[1], [0], [0], [1], [0, 0, 1, 1], [], []>} : vector<8x128xbf16>, vector<128x128xbf16>, vector<8x128xf32> -> vector<8x128xf32>
    %c0_164 = arith.constant 0 : index
    %c0_165 = arith.constant 0 : index
    %292 = vector.load %arg7[%c0_164, %c0_165] : memref<1x128xf32, #tpu.memory_space<vmem>>, vector<1x128xf32>
    %293 = vector.broadcast %292 : vector<1x128xf32> to vector<8x128xf32>
    %294 = arith.addf %291, %293 : vector<8x128xf32>
    %295 = arith.index_cast %c7_i32 : i32 to index
    %c0_166 = arith.constant 0 : index
    %c0_167 = arith.constant 0 : index
    %296 = vector.load %arg8[%295, %c0_166, %c0_167] : memref<8x8x128xf32, #tpu.memory_space<vmem>>, vector<1x8x128xf32>
    %297 = vector.shape_cast %296 : vector<1x8x128xf32> to vector<8x128xf32>
    %298 = vector.shape_cast %294 : vector<8x128xf32> to vector<1x8x128xf32>
    tpu.vector_store %arg8[%295, %c0_166, %c0_167], %298 {strides = array<i32>} : memref<8x8x128xf32, #tpu.memory_space<vmem>>, vector<1x8x128xf32>,
    %c8_i32 = arith.constant 8 : i32
    %c0_i32_168 = arith.constant 0 : i32
    %299 = arith.cmpi eq, %arg1, %c0_i32_168 : i32
    %300 = arith.extui %299 : i1 to i32
    %c0_i32_169 = arith.constant 0 : i32
    %301 = arith.cmpi ne, %300, %c0_i32_169 : i32
    scf.if %301 {
      %c0_170 = arith.constant 0 : index
      %c0_171 = arith.constant 0 : index
      %302 = vector.load %arg11[%c0_170, %c0_171] : memref<8x128xf32, #tpu.memory_space<vmem>>, vector<8x128xf32>
      %c0_172 = arith.constant 0 : index
      %c0_173 = arith.constant 0 : index
      %303 = vector.load %arg9[%c0_172, %c0_173] : memref<8x128xf32, #tpu.memory_space<vmem>>, vector<8x128xf32>
      tpu.vector_store %arg9[%c0_172, %c0_173], %302 {strides = array<i32>} : memref<8x128xf32, #tpu.memory_space<vmem>>, vector<8x128xf32>,
      %c0_174 = arith.constant 0 : index
      %c0_175 = arith.constant 0 : index
      %304 = vector.load %arg12[%c0_174, %c0_175] : memref<8x128xf32, #tpu.memory_space<vmem>>, vector<8x128xf32>
      %c0_176 = arith.constant 0 : index
      %c0_177 = arith.constant 0 : index
      %305 = vector.load %arg10[%c0_176, %c0_177] : memref<8x128xf32, #tpu.memory_space<vmem>>, vector<8x128xf32>
      tpu.vector_store %arg10[%c0_176, %c0_177], %304 {strides = array<i32>} : memref<8x128xf32, #tpu.memory_space<vmem>>, vector<8x128xf32>,
    } else {
    }
    return
  }
  func.func @transform_0(%arg0: i32, %arg1: i32) -> (i32, i32, i32) {
    %c0_i32 = arith.constant 0 : i32
    %c0_i32_0 = arith.constant 0 : i32
    return %arg1, %arg0, %c0_i32 : i32, i32, i32
  }
  func.func @transform_1(%arg0: i32, %arg1: i32) -> (i32, i32) {
    %c0_i32 = arith.constant 0 : i32
    %c0_i32_0 = arith.constant 0 : i32
    %c0_i32_1 = arith.constant 0 : i32
    return %c0_i32, %c0_i32_0 : i32, i32
  }
  func.func @transform_2(%arg0: i32, %arg1: i32) -> (i32, i32) {
    %c0_i32 = arith.constant 0 : i32
    %c0_i32_0 = arith.constant 0 : i32
    return %arg0, %c0_i32 : i32, i32
  }
  func.func @transform_3(%arg0: i32, %arg1: i32) -> (i32, i32) {
    %c0_i32 = arith.constant 0 : i32
    %c0_i32_0 = arith.constant 0 : i32
    return %arg0, %c0_i32 : i32, i32
  }
  func.func @transform_4(%arg0: i32, %arg1: i32) -> (i32, i32) {
    %c0_i32 = arith.constant 0 : i32
    %c0_i32_0 = arith.constant 0 : i32
    %c0_i32_1 = arith.constant 0 : i32
    return %c0_i32, %c0_i32_0 : i32, i32
  }
  func.func @transform_5(%arg0: i32, %arg1: i32) -> (i32, i32) {
    %c0_i32 = arith.constant 0 : i32
    %c0_i32_0 = arith.constant 0 : i32
    %c0_i32_1 = arith.constant 0 : i32
    return %c0_i32, %c0_i32_0 : i32, i32
  }
  func.func @transform_6(%arg0: i32, %arg1: i32) -> (i32, i32, i32) {
    %c0_i32 = arith.constant 0 : i32
    %c0_i32_0 = arith.constant 0 : i32
    return %arg1, %arg0, %c0_i32 : i32, i32, i32
  }
  func.func @transform_7(%arg0: i32, %arg1: i32) -> (i32, i32) {
    %c0_i32 = arith.constant 0 : i32
    %c0_i32_0 = arith.constant 0 : i32
    return %arg0, %c0_i32 : i32, i32
  }
  func.func @transform_8(%arg0: i32, %arg1: i32) -> (i32, i32) {
    %c0_i32 = arith.constant 0 : i32
    %c0_i32_0 = arith.constant 0 : i32
    return %arg0, %c0_i32 : i32, i32
  }
}

</mosaic_0001>

<bundles_post_ra>
// kernel: char_rnn_forward.1
= control target key start
LH: loop header
LB: loop body
LE: loop exit
PB: predicated region body
PF: predicated region fallthrough
CT: control target
= control target key end

     0   :  { %v4418_v1 = vmov 0   ;;  %v4419_v35 = vmov 0.0   ;;  %vm4420_vm0 = vmmov 0   ;;  %s5669_s1 = inlined_call_operand.vmem [shape: bf16[128,512], index: 1, kind: input, shape index: {}]   ;;  %s5670_s2 = inlined_call_operand.vmem [shape: f32[8,128], index: 2, kind: input, shape index: {}]   ;;  %s5671_s4 = inlined_call_operand.vmem [shape: bf16[128,128], index: 4, kind: input, shape index: {}]   ;;  %s5672_s0 = inlined_call_operand.vmem [shape: f32[8,8,512], index: 0, kind: input, shape index: {}]   ;;  %s5673_s3 = inlined_call_operand.vmem [shape: f32[8,128], index: 3, kind: input, shape index: {}]   ;;  %s5674_s5 = inlined_call_operand.vmem [shape: f32[1,128], index: 5, kind: input, shape index: {}]   ;;  %s5675_s6 = inlined_call_operand.vmem [shape: f32[8,8,128], index: 6, kind: output, shape index: {0}]   ;;  %s5676_s8 = inlined_call_operand.vmem [shape: f32[8,128], index: 8, kind: output, shape index: {2}]   ;;  %s5677_s7 = inlined_call_operand.vmem [shape: f32[8,128], index: 7, kind: output, shape index: {1}]  }
   0x1   :  { %v4469_v0 = vld [vmem:[%s5669_s1 + $0x4] ss:$16 sps:$4 sm:$0xff]   ;;  %266 = vmatprep.mubr.bf16.mxu0 %v4418_v1  ;;  %307 = vmatprep.mubr.bf16.mxu1 %v4418_v1  ;;  %v4476_v2 = vld [vmem:[%s5669_s1] ss:$16 sps:$4 sm:$0xff]   ;;  %v4499_v6 = vld [vmem:[%s5669_s1 + $0xc] ss:$16 sps:$4 sm:$0xff]  }
   0x2   :  { %234 = vmatprep.subr.bf16.mxu0 %v4469_v0  ;;  %v4482_v3 = vld [vmem:[%s5669_s1 + $0x24] ss:$16 sps:$4 sm:$0xff]   ;;  %v4488_v4 = vld [vmem:[%s5669_s1 + $0x20] ss:$16 sps:$4 sm:$0xff]   ;;  %v4504_v7 = vld [vmem:[%s5669_s1 + $0x8] ss:$16 sps:$4 sm:$0xff]   ;;  %275 = vmatprep.subr.bf16.mxu1 %v4499_v6 }
   0x3   :  { %235 = vmatpush1.bf16.msra.mxu0 %v4476_v2  ;;  %v4494_v5 = vld [vmem:[%s5669_s1 + $0x44] ss:$16 sps:$4 sm:$0xff]   ;;  %v4510_v8 = vld [vmem:[%s5669_s1 + $0x40] ss:$16 sps:$4 sm:$0xff]   ;;  %276 = vmatpush1.bf16.msra.mxu1 %v4504_v7  ;;  %v4523_v10 = vld [vmem:[%s5669_s1 + $0x2c] ss:$16 sps:$4 sm:$0xff]  }
   0x4   :  { %236 = vmatprep.subr.bf16.mxu0 %v4482_v3  ;;  %v4517_v9 = vld [vmem:[%s5669_s1 + $0x64] ss:$16 sps:$4 sm:$0xff]   ;;  %v4528_v11 = vld [vmem:[%s5669_s1 + $0x28] ss:$16 sps:$4 sm:$0xff]   ;;  %277 = vmatprep.subr.bf16.mxu1 %v4523_v10  ;;  %v4535_v12 = vld [vmem:[%s5669_s1 + $0x60] ss:$16 sps:$4 sm:$0xff]  }
   0x5   :  { %v4540_v13 = vld [vmem:[%s5669_s1 + $0x84] ss:$16 sps:$4 sm:$0xff]   ;;  %v4545_v14 = vld [vmem:[%s5669_s1 + $0x4c] ss:$16 sps:$4 sm:$0xff]   ;;  %v4552_v15 = vld [vmem:[%s5669_s1 + $0x48] ss:$16 sps:$4 sm:$0xff]  }
   0x6   :  { %v4558_v16 = vld [vmem:[%s5669_s1 + $0x6c] ss:$16 sps:$4 sm:$0xff]   ;;  %v4564_v17 = vld [vmem:[%s5669_s1 + $0x80] ss:$16 sps:$4 sm:$0xff]   ;;  %v4570_v18 = vld [vmem:[%s5669_s1 + $0xa4] ss:$16 sps:$4 sm:$0xff]  }
   0x7   :  { %237 = vmatpush1.bf16.msra.mxu0 %v4488_v4  ;;  %278 = vmatpush1.bf16.msra.mxu1 %v4528_v11  ;;  %v4576_v19 = vld [vmem:[%s5669_s1 + $0x68] ss:$16 sps:$4 sm:$0xff]   ;;  %v4582_v20 = vld [vmem:[%s5669_s1 + $0x8c] ss:$16 sps:$4 sm:$0xff]   ;;  %v4587_v21 = vld [vmem:[%s5669_s1 + $0xa0] ss:$16 sps:$4 sm:$0xff]  }
   0x8   :  { %238 = vmatprep.subr.bf16.mxu0 %v4494_v5  ;;  %279 = vmatprep.subr.bf16.mxu1 %v4545_v14  ;;  %v4593_v22 = vld [vmem:[%s5669_s1 + $0xc4] ss:$16 sps:$4 sm:$0xff]   ;;  %v4600_v23 = vld [vmem:[%s5669_s1 + $0x88] ss:$16 sps:$4 sm:$0xff]   ;;  %v4605_v24 = vld [vmem:[%s5669_s1 + $0xc0] ss:$16 sps:$4 sm:$0xff]  }
   0x9   :  { %v4611_v25 = vld [vmem:[%s5669_s1 + $0xac] ss:$16 sps:$4 sm:$0xff]   ;;  %v4616_v26 = vld [vmem:[%s5669_s1 + $0xe4] ss:$16 sps:$4 sm:$0xff]   ;;  %v4621_v27 = vld [vmem:[%s5669_s1 + $0xa8] ss:$16 sps:$4 sm:$0xff]  }
   0xa   :  { %v4627_v28 = vld [vmem:[%s5669_s1 + $0xcc] ss:$16 sps:$4 sm:$0xff]   ;;  %v4634_v29 = vld [vmem:[%s5669_s1 + $0xe0] ss:$16 sps:$4 sm:$0xff]   ;;  %v4643_v31 = vld [vmem:[%s5669_s1 + $0xc8] ss:$16 sps:$4 sm:$0xff]  }
   0xb   :  { %239 = vmatpush1.bf16.msra.mxu0 %v4510_v8  ;;  %280 = vmatpush1.bf16.msra.mxu1 %v4552_v15  ;;  %v31_v30 = vld [vmem:[%s5670_s2] sm:$0xff]  ;;  %v4649_v32 = vld [vmem:[%s5669_s1 + $0xec] ss:$16 sps:$4 sm:$0xff]   ;;  %v4657_v34 = vld [vmem:[%s5669_s1 + $0xe8] ss:$16 sps:$4 sm:$0xff]  }
   0xc   :  { %240 = vmatprep.subr.bf16.mxu0 %v4517_v9  ;;  %281 = vmatprep.subr.bf16.mxu1 %v4558_v16  ;;  %v41_v33 = vpack.c.bf16 %v31_v30, %v31_v30  ;;  %v4130_v36 = vld [vmem:[%s5671_s4] sm:$0xff]   ;;  %v4131_v37 = vld [vmem:[%s5671_s4 + $0x8] sm:$0xff]   ;;  %v4132_v38 = vld [vmem:[%s5671_s4 + $0x10] sm:$0xff]  }
   0xd   :  { %v4133_v39 = vld [vmem:[%s5671_s4 + $0x18] sm:$0xff]   ;;  %v4134_v40 = vld [vmem:[%s5671_s4 + $0x20] sm:$0xff]   ;;  %v4135_v41 = vld [vmem:[%s5671_s4 + $0x28] sm:$0xff]  }
   0xe   :  { %v4136_v42 = vld [vmem:[%s5671_s4 + $0x30] sm:$0xff]   ;;  %v4137_v43 = vld [vmem:[%s5671_s4 + $0x38] sm:$0xff]   ;;  %v37_v44 = vld [vmem:[%s5672_s0] sm:$0xff] }
   0xf   :  { %241 = vmatpush1.bf16.msra.mxu0 %v4535_v12  ;;  %282 = vmatpush1.bf16.msra.mxu1 %v4576_v19  ;;  %v38_v45 = vld [vmem:[%s5672_s0 + $0x8] sm:$0xff]  ;;  %v39_v54 = vld [vmem:[%s5672_s0 + $0x10] sm:$0xff]  ;;  %v40_v60 = vld [vmem:[%s5672_s0 + $0x18] sm:$0xff] }
  0x10   :  { %242 = vmatprep.subr.bf16.mxu0 %v4540_v13  ;;  %283 = vmatprep.subr.bf16.mxu1 %v4582_v20 }
  0x13   :  { %243 = vmatpush1.bf16.msra.mxu0 %v4564_v17  ;;  %284 = vmatpush1.bf16.msra.mxu1 %v4600_v23 }
  0x14   :  { %244 = vmatprep.subr.bf16.mxu0 %v4570_v18  ;;  %285 = vmatprep.subr.bf16.mxu1 %v4611_v25 }
  0x17   :  { %245 = vmatpush1.bf16.msra.mxu0 %v4587_v21  ;;  %286 = vmatpush1.bf16.msra.mxu1 %v4621_v27 }
  0x18   :  { %246 = vmatprep.subr.bf16.mxu0 %v4593_v22  ;;  %287 = vmatprep.subr.bf16.mxu1 %v4627_v28 }
  0x1b   :  { %247 = vmatpush1.bf16.msra.mxu0 %v4605_v24  ;;  %288 = vmatpush1.bf16.msra.mxu1 %v4643_v31 }
  0x1c   :  { %248 = vmatprep.subr.bf16.mxu0 %v4616_v26  ;;  %289 = vmatprep.subr.bf16.mxu1 %v4649_v32 }
  0x1f   :  { %249 = vmatpush1.bf16.msra.mxu0 %v4634_v29  ;;  %290 = vmatpush1.bf16.msra.mxu1 %v4657_v34 }
  0x20   :  { %659 = vmatprep.subr.bf16.mxu1 %v4469_v0  ;;  %3919 = vmatprep.subr.bf16.mxu0 %v4419_v35 }
  0x22   :  { %267 = vmatmul.mubr.bf16.vlgmr.msra.gmra.mrb[0].mxu0 %v41_v33  ;;  %308 = vmatmul.mubr.bf16.vlgmr.msra.gmra.mrb[0].mxu1 %v41_v33 }
  0x23   :  { %660 = vmatpush1.bf16.msra.mxu1 %v4476_v2  ;;  %691 = vmatprep.mubr.bf16.mxu1 %v4418_v1 }
  0x24   :  { %661 = vmatprep.subr.bf16.mxu1 %v4482_v3  ;;  %3920 = vmatpush3.bf16.msra.mxu0 %v4130_v36 }
  0x25   :  { %3921 = vmatprep.subr.bf16.mxu0 %v4419_v35  ;;  %3935 = vmatprep.mubr.msk.bf16.mxu0 %vm4420_vm0, %v4419_v35 }
  0x27   :  { %662 = vmatpush1.bf16.msra.mxu1 %v4488_v4 }
  0x28   :  { %663 = vmatprep.subr.bf16.mxu1 %v4494_v5  ;;  %3922 = vmatpush3.bf16.msra.mxu0 %v4131_v37 }
  0x29   :  { %3923 = vmatprep.subr.bf16.mxu0 %v4419_v35 }
  0x2b   :  { %664 = vmatpush1.bf16.msra.mxu1 %v4510_v8 }
  0x2c   :  { %665 = vmatprep.subr.bf16.mxu1 %v4517_v9  ;;  %3924 = vmatpush3.bf16.msra.mxu0 %v4132_v38 }
  0x2d   :  { %3925 = vmatprep.subr.bf16.mxu0 %v4419_v35 }
  0x2f   :  { %666 = vmatpush1.bf16.msra.mxu1 %v4535_v12 }
  0x30   :  { %667 = vmatprep.subr.bf16.mxu1 %v4540_v13  ;;  %3926 = vmatpush3.bf16.msra.mxu0 %v4133_v39  ;;  %v33_v39 = vld [vmem:[%s5673_s3] sm:$0xff] }
  0x31   :  { %3927 = vmatprep.subr.bf16.mxu0 %v4419_v35 }
  0x33   :  { %668 = vmatpush1.bf16.msra.mxu1 %v4564_v17 }
  0x34   :  { %669 = vmatprep.subr.bf16.mxu1 %v4570_v18  ;;  %3928 = vmatpush3.bf16.msra.mxu0 %v4134_v40 }
  0x35   :  { %3929 = vmatprep.subr.bf16.mxu0 %v4419_v35 }
  0x37   :  { %670 = vmatpush1.bf16.msra.mxu1 %v4587_v21 }
  0x38   :  { %671 = vmatprep.subr.bf16.mxu1 %v4593_v22  ;;  %3930 = vmatpush3.bf16.msra.mxu0 %v4135_v41 }
  0x39   :  { %3931 = vmatprep.subr.bf16.mxu0 %v4419_v35 }
  0x3b   :  { %672 = vmatpush1.bf16.msra.mxu1 %v4605_v24 }
  0x3c   :  { %673 = vmatprep.subr.bf16.mxu1 %v4616_v26  ;;  %3932 = vmatpush3.bf16.msra.mxu0 %v4136_v42 }
  0x3d   :  { %3933 = vmatprep.subr.bf16.mxu0 %v4419_v35 }
  0x3f   :  { %674 = vmatpush1.bf16.msra.mxu1 %v4634_v29 }
  0x40   :  { %3939 = vmatprep.subr.bf16.mxu1 %v4419_v35  ;;  %3934 = vmatpush3.bf16.msra.mxu0 %v4137_v43 }
  0x41   :  { %700 = vmatprep.subr.bf16.mxu0 %v4499_v6 }
  0xf5   :  { %v268_v46 = vpop.f32.mrb[0].mxu0  ;;  %v309_v55 = vpop.f32.mrb[0].mxu1 }
  0xf6   :  { %v316_v47 = vadd.f32 %v268_v46, %v37_v44  ;;  %v270_v48 = vpop.f32.mrb[1].mxu0  ;;  %v311_v56 = vpop.f32.mrb[1].mxu1  ;;  %v318_v57 = vadd.f32 %v309_v55, %v39_v54 }
  0xf7   :  { %v317_v49 = vadd.f32 %v270_v48, %v38_v45  ;;  %v272_v50 = vpop.f32.mrb[2].mxu0  ;;  %v313_v58 = vpop.f32.mrb[2].mxu1  ;;  %v319_v62 = vadd.f32 %v311_v56, %v40_v60  ;;  %v3506_v60 = vld [vmem:[%s5672_s0 + $0x30] sm:$0xff] }
  0xf8   :  { %v3492_v51 = vmul.f32 -1.442695, %v316_v47  ;;  %v273_v52 = vpop.f32.mrb[3].mxu0  ;;  %v314_v59 = vpop.f32.mrb[3].mxu1  ;;  %v3494_v61 = vmul.f32 -1.442695, %v318_v57 }
  0xf9   :  { %v3493_v53 = vmul.f32 -1.442695, %v317_v49  ;;  %v3504_v52 = vld [vmem:[%s5672_s0 + $0x20] sm:$0xff] }
  0xfa   :  { %4290 = vpow2.f32 %v3492_v51 }
  0xfb   :  { %4292 = vpow2.f32 %v3493_v53 }
  0xfc   :  { %4294 = vpow2.f32 %v3494_v61 }
  0xfd   :  { %4296 = vtanh.f32 %v319_v62  ;;  %v3507_v62 = vld [vmem:[%s5672_s0 + $0x38] sm:$0xff] }
 0x104   :  { %v4291_v63 = vpop.eup %4290 }
 0x105   :  { %v4293_v30 = vpop.eup %4292  ;;  %v329_v33 = vadd.f32 1.0, %v4291_v63 }
 0x106   :  { %v330_v36 = vadd.f32 1.0, %v4293_v30  ;;  %v4295_v37 = vpop.eup %4294 }
 0x107   :  { %4298 = vrcp.f32 %v329_v33  ;;  %v4297_v38 = vpop.eup %4296  ;;  %v331_v41 = vadd.f32 1.0, %v4295_v37 }
 0x108   :  { %4300 = vrcp.f32 %v330_v36 }
 0x109   :  { %4302 = vrcp.f32 %v331_v41 }
 0x111   :  { %v4299_v40 = vpop.eup %4298 }
 0x112   :  { %v4301_v42 = vpop.eup %4300  ;;  %v340_v43 = vmul.f32 %v4299_v40, %v4297_v38 }
 0x113   :  { %v339_v44 = vmul.f32 %v4301_v42, %v33_v39  ;;  %v4303_v46 = vpop.eup %4302 }
 0x115   :  { %v4731_v45 = vadd.f32 %v340_v43, %v339_v44 }
 0x117   :  { %4304 = vtanh.f32 %v4731_v45 }
 0x121   :  { %v4305_v47 = vpop.eup %4304 }
 0x122   :  { %v343_v48 = vmul.f32 %v4305_v47, %v4303_v46 }
 0x124   :  { %v346_v49 = vpack.c.bf16 %v343_v48, %v343_v48 }
 0x126   :  { %3936 = vmatmul.mubr.bf16.vlgmr.msra.gmra.mrb[4].mxu0 %v346_v49  ;;  %692 = vmatmul.mubr.bf16.vlgmr.msra.gmra.mrb[4].mxu1 %v346_v49 }
 0x127   :  { %701 = vmatpush1.bf16.msra.mxu0 %v4504_v7  ;;  %732 = vmatprep.mubr.bf16.mxu0 %v4418_v1 }
 0x128   :  { %702 = vmatprep.subr.bf16.mxu0 %v4523_v10  ;;  %3955 = vmatprep.mubr.msk.bf16.mxu1 %vm4420_vm0, %v4419_v35 }
 0x12b   :  { %703 = vmatpush1.bf16.msra.mxu0 %v4528_v11 }
 0x12c   :  { %704 = vmatprep.subr.bf16.mxu0 %v4545_v14 }
 0x12f   :  { %705 = vmatpush1.bf16.msra.mxu0 %v4552_v15 }
 0x130   :  { %706 = vmatprep.subr.bf16.mxu0 %v4558_v16 }
 0x133   :  { %707 = vmatpush1.bf16.msra.mxu0 %v4576_v19 }
 0x134   :  { %708 = vmatprep.subr.bf16.mxu0 %v4582_v20 }
 0x137   :  { %709 = vmatpush1.bf16.msra.mxu0 %v4600_v23 }
 0x138   :  { %710 = vmatprep.subr.bf16.mxu0 %v4611_v25 }
 0x13b   :  { %711 = vmatpush1.bf16.msra.mxu0 %v4621_v27 }
 0x13c   :  { %712 = vmatprep.subr.bf16.mxu0 %v4627_v28 }
 0x13f   :  { %713 = vmatpush1.bf16.msra.mxu0 %v4643_v31 }
 0x140   :  { %714 = vmatprep.subr.bf16.mxu0 %v4649_v32 }
 0x143   :  { %715 = vmatpush1.bf16.msra.mxu0 %v4657_v34 }
 0x144   :  { %1085 = vmatprep.subr.bf16.mxu0 %v4469_v0  ;;  %v4138_v0 = vld [vmem:[%s5671_s4] sm:$0xff]  }
 0x145   :  { %3940 = vmatpush3.bf16.msra.mxu1 %v4138_v0 }
 0x146   :  { %733 = vmatmul.mubr.bf16.vlgmr.msra.gmra.mrb[8].mxu0 %v346_v49  ;;  %3941 = vmatprep.subr.bf16.mxu1 %v4419_v35 }
 0x147   :  { %1086 = vmatpush1.bf16.msra.mxu0 %v4476_v2  ;;  %1117 = vmatprep.mubr.bf16.mxu0 %v4418_v1  ;;  %v4139_v2 = vld [vmem:[%s5671_s4 + $0x8] sm:$0xff]  }
 0x148   :  { %1087 = vmatprep.subr.bf16.mxu0 %v4482_v3  ;;  %v4140_v3 = vld [vmem:[%s5671_s4 + $0x10] sm:$0xff]  }
 0x149   :  { %3942 = vmatpush3.bf16.msra.mxu1 %v4139_v2 }
 0x14a   :  { %3943 = vmatprep.subr.bf16.mxu1 %v4419_v35 }
 0x14b   :  { %1088 = vmatpush1.bf16.msra.mxu0 %v4488_v4  ;;  %v4141_v4 = vld [vmem:[%s5671_s4 + $0x18] sm:$0xff]  }
 0x14c   :  { %1089 = vmatprep.subr.bf16.mxu0 %v4494_v5  ;;  %v4142_v5 = vld [vmem:[%s5671_s4 + $0x20] sm:$0xff]  }
 0x14d   :  { %3944 = vmatpush3.bf16.msra.mxu1 %v4140_v3 }
 0x14e   :  { %3945 = vmatprep.subr.bf16.mxu1 %v4419_v35 }
 0x14f   :  { %1090 = vmatpush1.bf16.msra.mxu0 %v4510_v8  ;;  %v4143_v8 = vld [vmem:[%s5671_s4 + $0x28] sm:$0xff]  }
 0x150   :  { %1091 = vmatprep.subr.bf16.mxu0 %v4517_v9  ;;  %v4144_v9 = vld [vmem:[%s5671_s4 + $0x30] sm:$0xff]  }
 0x151   :  { %3946 = vmatpush3.bf16.msra.mxu1 %v4141_v4  ;;  %v4932_v4 = vld [vmem:[%s5669_s1 + $0xa0] ss:$16 sps:$4 sm:$0xff]  }
 0x152   :  { %3947 = vmatprep.subr.bf16.mxu1 %v4419_v35 }
 0x153   :  { %1092 = vmatpush1.bf16.msra.mxu0 %v4535_v12  ;;  %v4145_v12 = vld [vmem:[%s5671_s4 + $0x38] sm:$0xff]  }
 0x154   :  { %1093 = vmatprep.subr.bf16.mxu0 %v4540_v13  ;;  %v4805_v13 = vld [vmem:[%s5674_s5] ss:$0 sm:$0xff] }
 0x155   :  { %3948 = vmatpush3.bf16.msra.mxu1 %v4142_v5  ;;  %v4937_v5 = vld [vmem:[%s5669_s1 + $0xa4] ss:$16 sps:$4 sm:$0xff]  }
 0x156   :  { %3949 = vmatprep.subr.bf16.mxu1 %v4419_v35 }
 0x157   :  { %1094 = vmatpush1.bf16.msra.mxu0 %v4564_v17 }
 0x158   :  { %1095 = vmatprep.subr.bf16.mxu0 %v4570_v18 }
 0x159   :  { %3950 = vmatpush3.bf16.msra.mxu1 %v4143_v8  ;;  %v4942_v8 = vld [vmem:[%s5669_s1 + $0xc4] ss:$16 sps:$4 sm:$0xff]  }
 0x15a   :  { %3951 = vmatprep.subr.bf16.mxu1 %v4419_v35 }
 0x15b   :  { %1096 = vmatpush1.bf16.msra.mxu0 %v4587_v21 }
 0x15c   :  { %1097 = vmatprep.subr.bf16.mxu0 %v4593_v22 }
 0x15d   :  { %3952 = vmatpush3.bf16.msra.mxu1 %v4144_v9  ;;  %v4170_v9 = vld [vmem:[%s5671_s4 + $0x30] sm:$0xff]  }
 0x15e   :  { %3953 = vmatprep.subr.bf16.mxu1 %v4419_v35 }
 0x15f   :  { %1098 = vmatpush1.bf16.msra.mxu0 %v4605_v24 }
 0x160   :  { %1099 = vmatprep.subr.bf16.mxu0 %v4616_v26 }
 0x161   :  { %3954 = vmatpush3.bf16.msra.mxu1 %v4145_v12  ;;  %v4953_v12 = vld [vmem:[%s5669_s1 + $0xc0] ss:$16 sps:$4 sm:$0xff]  }
 0x162   :  { %1126 = vmatprep.subr.bf16.mxu1 %v4499_v6  ;;  %v3505_v6 = vld [vmem:[%s5672_s0 + $0x28] sm:$0xff] }
 0x163   :  { %1100 = vmatpush1.bf16.msra.mxu0 %v4634_v29 }
 0x164   :  { %3959 = vmatprep.subr.bf16.mxu0 %v4419_v35 }
 0x1f9   :  { %v452_v17 = vpop.f32.mrb[4].mxu0  ;;  %v693_v18 = vpop.f32.mrb[4].mxu1 }
 0x1fa   :  { %v453_v21 = vadd.f32 %v4805_v13, %v452_v17  ;;  %v3937_v22 = vpop.f32.mrb[5].mxu0  ;;  %v695_v24 = vpop.f32.mrb[5].mxu1  ;;  %v741_v54 = vadd.f32 %v3504_v52, %v693_v18  ;;  %v4959_v17 = vld [vmem:[%s5669_s1 + $0xe4] ss:$16 sps:$4 sm:$0xff]   ;;  %v4174_v18 = vld [vmem:[%s5671_s4 + $0x38] sm:$0xff]  }
 0x1fb   :  { %v455_v26 = vpop.f32.mrb[6].mxu0  ;;  %v697_v29 = vpop.f32.mrb[6].mxu1  ;;  %v742_v53 = vadd.f32 %v3505_v6, %v695_v24  ;;  %v4974_v22 = vld [vmem:[%s5669_s1 + $0xc] ss:$16 sps:$4 sm:$0xff]  }
 0x1fc   :  { %458 = vst [vmem:[%s5675_s6] sm:$0xff] %v453_v21  ;;  %v3938_v50 = vpop.f32.mrb[7].mxu0  ;;  %v698_v51 = vpop.f32.mrb[7].mxu1  ;;  %v3540_v56 = vmul.f32 -1.442695, %v741_v54  ;;  %v4969_v21 = vld [vmem:[%s5669_s1 + $0xe0] ss:$16 sps:$4 sm:$0xff]  }
 0x1fd   :  { %v3541_v55 = vmul.f32 -1.442695, %v742_v53 }
 0x1ff   :  { %4306 = vpow2.f32 %v3541_v55  ;;  %v3554_v55 = vld [vmem:[%s5672_s0 + $0x48] sm:$0xff] }
 0x200   :  { %4308 = vpow2.f32 %v3540_v56  ;;  %v3553_v56 = vld [vmem:[%s5672_s0 + $0x40] sm:$0xff] }
 0x209   :  { %v4307_v57 = vpop.eup %4306 }
 0x20a   :  { %v4309_v58 = vpop.eup %4308  ;;  %v755_v59 = vadd.f32 1.0, %v4307_v57 }
 0x20b   :  { %v754_v61 = vadd.f32 1.0, %v4309_v58 }
 0x20c   :  { %4310 = vrcp.f32 %v755_v59 }
 0x20d   :  { %4312 = vrcp.f32 %v754_v61 }
 0x216   :  { %v4311_v40 = vpop.eup %4310 }
 0x217   :  { %v4313_v41 = vpop.eup %4312  ;;  %v764_v44 = vmul.f32 %v4311_v40, %v4731_v45  ;;  %v4166_v45 = vld [vmem:[%s5671_s4 + $0x28] sm:$0xff]  }
 0x219   :  { %v734_v63 = vpop.f32.mrb[8].mxu0 }
 0x21a   :  { %v743_v30 = vadd.f32 %v3506_v60, %v734_v63  ;;  %v736_v33 = vpop.f32.mrb[9].mxu0 }
 0x21b   :  { %v744_v36 = vadd.f32 %v3507_v62, %v736_v33  ;;  %v738_v37 = vpop.f32.mrb[10].mxu0 }
 0x21c   :  { %v3542_v38 = vmul.f32 -1.442695, %v743_v30  ;;  %v739_v39 = vpop.f32.mrb[11].mxu0  ;;  %v3555_v30 = vld [vmem:[%s5672_s0 + $0x50] sm:$0xff] }
 0x21d   :  { %4314 = vtanh.f32 %v744_v36  ;;  %v3556_v36 = vld [vmem:[%s5672_s0 + $0x58] sm:$0xff] }
 0x21e   :  { %4316 = vpow2.f32 %v3542_v38 }
 0x227   :  { %v4315_v42 = vpop.eup %4314 }
 0x228   :  { %v4317_v43 = vpop.eup %4316  ;;  %v765_v46 = vmul.f32 %v4315_v42, %v4313_v41 }
 0x229   :  { %v756_v47 = vadd.f32 1.0, %v4317_v43 }
 0x22a   :  { %v4824_v48 = vadd.f32 %v765_v46, %v764_v44 }
 0x22b   :  { %4318 = vrcp.f32 %v756_v47 }
 0x22c   :  { %4320 = vtanh.f32 %v4824_v48 }
 0x235   :  { %v4319_v49 = vpop.eup %4318 }
 0x236   :  { %v4321_v0 = vpop.eup %4320 }
 0x237   :  { %v768_v2 = vmul.f32 %v4321_v0, %v4319_v49 }
 0x239   :  { %v771_v3 = vpack.c.bf16 %v768_v2, %v768_v2 }
 0x23b   :  { %3956 = vmatmul.mubr.bf16.vlgmr.msra.gmra.mrb[8].mxu1 %v771_v3  ;;  %1118 = vmatmul.mubr.bf16.vlgmr.msra.gmra.mrb[12].mxu0 %v771_v3 }
 0x23c   :  { %1127 = vmatpush1.bf16.msra.mxu1 %v4504_v7  ;;  %1158 = vmatprep.mubr.bf16.mxu1 %v4418_v1  ;;  %v4146_v7 = vld [vmem:[%s5671_s4] sm:$0xff]  }
 0x23d   :  { %1128 = vmatprep.subr.bf16.mxu1 %v4523_v10  ;;  %3975 = vmatprep.mubr.msk.bf16.mxu0 %vm4420_vm0, %v4419_v35  ;;  %v4852_v10 = vld [vmem:[%s5669_s1 + $0x4] ss:$16 sps:$4 sm:$0xff]  }
 0x23e   :  { %3960 = vmatpush3.bf16.msra.mxu0 %v4146_v7 }
 0x23f   :  { %3961 = vmatprep.subr.bf16.mxu0 %v4419_v35 }
 0x240   :  { %1129 = vmatpush1.bf16.msra.mxu1 %v4528_v11  ;;  %v4857_v11 = vld [vmem:[%s5669_s1] ss:$16 sps:$4 sm:$0xff]  }
 0x241   :  { %1130 = vmatprep.subr.bf16.mxu1 %v4545_v14  ;;  %v4150_v14 = vld [vmem:[%s5671_s4 + $0x8] sm:$0xff]  }
 0x242   :  { %3962 = vmatpush3.bf16.msra.mxu0 %v4150_v14 }
 0x243   :  { %3963 = vmatprep.subr.bf16.mxu0 %v4419_v35 }
 0x244   :  { %1131 = vmatpush1.bf16.msra.mxu1 %v4552_v15  ;;  %v4868_v15 = vld [vmem:[%s5669_s1 + $0x24] ss:$16 sps:$4 sm:$0xff]  }
 0x245   :  { %1132 = vmatprep.subr.bf16.mxu1 %v4558_v16  ;;  %v4873_v16 = vld [vmem:[%s5669_s1 + $0x20] ss:$16 sps:$4 sm:$0xff]  }
 0x248   :  { %1133 = vmatpush1.bf16.msra.mxu1 %v4576_v19  ;;  %v4154_v19 = vld [vmem:[%s5671_s4 + $0x10] sm:$0xff]  }
 0x249   :  { %1134 = vmatprep.subr.bf16.mxu1 %v4582_v20  ;;  %v4884_v20 = vld [vmem:[%s5669_s1 + $0x44] ss:$16 sps:$4 sm:$0xff]   ;;  %3964 = vmatpush3.bf16.msra.mxu0 %v4154_v19 }
 0x24a   :  { %3965 = vmatprep.subr.bf16.mxu0 %v4419_v35 }
 0x24c   :  { %1135 = vmatpush1.bf16.msra.mxu1 %v4600_v23  ;;  %v4889_v23 = vld [vmem:[%s5669_s1 + $0x40] ss:$16 sps:$4 sm:$0xff]  }
 0x24d   :  { %1136 = vmatprep.subr.bf16.mxu1 %v4611_v25  ;;  %v4158_v25 = vld [vmem:[%s5671_s4 + $0x18] sm:$0xff]  }
 0x24e   :  { %3966 = vmatpush3.bf16.msra.mxu0 %v4158_v25 }
 0x24f   :  { %3967 = vmatprep.subr.bf16.mxu0 %v4419_v35 }
 0x250   :  { %1137 = vmatpush1.bf16.msra.mxu1 %v4621_v27  ;;  %v4900_v27 = vld [vmem:[%s5669_s1 + $0x64] ss:$16 sps:$4 sm:$0xff]  }
 0x251   :  { %1138 = vmatprep.subr.bf16.mxu1 %v4627_v28  ;;  %v4905_v28 = vld [vmem:[%s5669_s1 + $0x60] ss:$16 sps:$4 sm:$0xff]  }
 0x254   :  { %1139 = vmatpush1.bf16.msra.mxu1 %v4643_v31  ;;  %v4162_v31 = vld [vmem:[%s5671_s4 + $0x20] sm:$0xff]  }
 0x255   :  { %1140 = vmatprep.subr.bf16.mxu1 %v4649_v32  ;;  %v4916_v32 = vld [vmem:[%s5669_s1 + $0x84] ss:$16 sps:$4 sm:$0xff]   ;;  %3968 = vmatpush3.bf16.msra.mxu0 %v4162_v31  ;;  %v5003_v31 = vld [vmem:[%s5669_s1 + $0x8] ss:$16 sps:$4 sm:$0xff]  }
 0x256   :  { %3969 = vmatprep.subr.bf16.mxu0 %v4419_v35 }
 0x258   :  { %1141 = vmatpush1.bf16.msra.mxu1 %v4657_v34  ;;  %v4921_v34 = vld [vmem:[%s5669_s1 + $0x80] ss:$16 sps:$4 sm:$0xff]  }
 0x259   :  { %1511 = vmatprep.subr.bf16.mxu1 %v4852_v10  ;;  %3970 = vmatpush3.bf16.msra.mxu0 %v4166_v45 }
 0x25a   :  { %3971 = vmatprep.subr.bf16.mxu0 %v4419_v35 }
 0x25b   :  { %1159 = vmatmul.mubr.bf16.vlgmr.msra.gmra.mrb[12].mxu1 %v771_v3 }
 0x25c   :  { %1543 = vmatprep.mubr.bf16.mxu1 %v4418_v1  ;;  %1512 = vmatpush1.bf16.msra.mxu1 %v4857_v11 }
 0x25d   :  { %1513 = vmatprep.subr.bf16.mxu1 %v4868_v15  ;;  %3972 = vmatpush3.bf16.msra.mxu0 %v4170_v9  ;;  %v5014_v9 = vld [vmem:[%s5669_s1 + $0x28] ss:$16 sps:$4 sm:$0xff]  }
 0x25e   :  { %3973 = vmatprep.subr.bf16.mxu0 %v4419_v35 }
 0x260   :  { %1514 = vmatpush1.bf16.msra.mxu1 %v4873_v16 }
 0x261   :  { %1515 = vmatprep.subr.bf16.mxu1 %v4884_v20  ;;  %3974 = vmatpush3.bf16.msra.mxu0 %v4174_v18  ;;  %v5021_v18 = vld [vmem:[%s5669_s1 + $0x4c] ss:$16 sps:$4 sm:$0xff]  }
 0x262   :  { %1552 = vmatprep.subr.bf16.mxu0 %v4974_v22 }
 0x264   :  { %1516 = vmatpush1.bf16.msra.mxu1 %v4889_v23 }
 0x265   :  { %1517 = vmatprep.subr.bf16.mxu1 %v4900_v27 }
 0x268   :  { %1518 = vmatpush1.bf16.msra.mxu1 %v4905_v28 }
 0x269   :  { %1519 = vmatprep.subr.bf16.mxu1 %v4916_v32 }
 0x26c   :  { %1520 = vmatpush1.bf16.msra.mxu1 %v4921_v34 }
 0x26d   :  { %1521 = vmatprep.subr.bf16.mxu1 %v4937_v5 }
 0x270   :  { %1522 = vmatpush1.bf16.msra.mxu1 %v4932_v4 }
 0x271   :  { %1523 = vmatprep.subr.bf16.mxu1 %v4942_v8 }
 0x274   :  { %1524 = vmatpush1.bf16.msra.mxu1 %v4953_v12 }
 0x275   :  { %1525 = vmatprep.subr.bf16.mxu1 %v4959_v17 }
 0x278   :  { %1526 = vmatpush1.bf16.msra.mxu1 %v4969_v21 }
 0x279   :  { %3979 = vmatprep.subr.bf16.mxu1 %v4419_v35 }
 0x30e   :  { %v877_v24 = vpop.f32.mrb[8].mxu1  ;;  %v1119_v26 = vpop.f32.mrb[12].mxu0 }
 0x30f   :  { %v878_v29 = vadd.f32 %v4805_v13, %v877_v24  ;;  %v3957_v50 = vpop.f32.mrb[9].mxu1  ;;  %v1121_v51 = vpop.f32.mrb[13].mxu0  ;;  %v1167_v58 = vadd.f32 %v3553_v56, %v1119_v26  ;;  %v5029_v24 = vld [vmem:[%s5669_s1 + $0x48] ss:$16 sps:$4 sm:$0xff]   ;;  %v5035_v26 = vld [vmem:[%s5669_s1 + $0x6c] ss:$16 sps:$4 sm:$0xff]  }
 0x310   :  { %v880_v6 = vpop.f32.mrb[10].mxu1  ;;  %v1123_v52 = vpop.f32.mrb[14].mxu0  ;;  %v1168_v57 = vadd.f32 %v3554_v55, %v1121_v51  ;;  %v5047_v50 = vld [vmem:[%s5669_s1 + $0x8c] ss:$16 sps:$4 sm:$0xff]   ;;  %v5053_v51 = vld [vmem:[%s5669_s1 + $0x88] ss:$16 sps:$4 sm:$0xff]  }
 0x311   :  { %3552 = vst [vmem:[%s5675_s6 + $0x8] sm:$0xff] %v878_v29  ;;  %v3958_v53 = vpop.f32.mrb[11].mxu1  ;;  %v1124_v54 = vpop.f32.mrb[15].mxu0  ;;  %v3589_v60 = vmul.f32 -1.442695, %v1167_v58  ;;  %v4203_v58 = vld [vmem:[%s5671_s4 + $0x8] sm:$0xff]  }
 0x312   :  { %v3590_v59 = vmul.f32 -1.442695, %v1168_v57  ;;  %v5041_v29 = vld [vmem:[%s5669_s1 + $0x68] ss:$16 sps:$4 sm:$0xff]   ;;  %v5059_v6 = vld [vmem:[%s5669_s1 + $0xac] ss:$16 sps:$4 sm:$0xff]  }
 0x313   :  { %v5065_v52 = vld [vmem:[%s5669_s1 + $0xa8] ss:$16 sps:$4 sm:$0xff]   ;;  %v5071_v53 = vld [vmem:[%s5669_s1 + $0xcc] ss:$16 sps:$4 sm:$0xff]   ;;  %v4202_v57 = vld [vmem:[%s5671_s4] sm:$0xff]  }
 0x314   :  { %4322 = vpow2.f32 %v3590_v59  ;;  %v5077_v54 = vld [vmem:[%s5669_s1 + $0xc8] ss:$16 sps:$4 sm:$0xff]   ;;  %v5083_v55 = vld [vmem:[%s5669_s1 + $0xec] ss:$16 sps:$4 sm:$0xff]   ;;  %v4204_v59 = vld [vmem:[%s5671_s4 + $0x10] sm:$0xff]  }
 0x315   :  { %4324 = vpow2.f32 %v3589_v60  ;;  %v5089_v56 = vld [vmem:[%s5669_s1 + $0xe8] ss:$16 sps:$4 sm:$0xff]  }
 0x316   :  { %v4205_v60 = vld [vmem:[%s5671_s4 + $0x18] sm:$0xff]  }
 0x31e   :  { %v4323_v61 = vpop.eup %4322 }
 0x31f   :  { %v4325_v62 = vpop.eup %4324  ;;  %v1181_v63 = vadd.f32 1.0, %v4323_v61  ;;  %v4206_v61 = vld [vmem:[%s5671_s4 + $0x20] sm:$0xff]  }
 0x320   :  { %v1180_v33 = vadd.f32 1.0, %v4325_v62  ;;  %v4207_v62 = vld [vmem:[%s5671_s4 + $0x28] sm:$0xff]  }
 0x321   :  { %4326 = vrcp.f32 %v1181_v63  ;;  %v4208_v63 = vld [vmem:[%s5671_s4 + $0x30] sm:$0xff]  }
 0x322   :  { %4328 = vrcp.f32 %v1180_v33 }
 0x32b   :  { %v4327_v44 = vpop.eup %4326 }
 0x32c   :  { %v4329_v46 = vpop.eup %4328  ;;  %v1190_v0 = vmul.f32 %v4327_v44, %v4824_v48  ;;  %v5008_v48 = vld [vmem:[%s5669_s1 + $0x2c] ss:$16 sps:$4 sm:$0xff]  }
 0x32d   :  { %v3603_v44 = vld [vmem:[%s5672_s0 + $0x68] sm:$0xff] }
 0x32e   :  { %v1160_v37 = vpop.f32.mrb[12].mxu1 }
 0x32f   :  { %v1169_v38 = vadd.f32 %v3555_v30, %v1160_v37  ;;  %v1162_v39 = vpop.f32.mrb[13].mxu1  ;;  %v4209_v30 = vld [vmem:[%s5671_s4 + $0x38] sm:$0xff]  }
 0x330   :  { %v1170_v40 = vadd.f32 %v3556_v36, %v1162_v39  ;;  %v1164_v41 = vpop.f32.mrb[14].mxu1 }
 0x331   :  { %v3591_v42 = vmul.f32 -1.442695, %v1169_v38  ;;  %v1165_v43 = vpop.f32.mrb[15].mxu1 }
 0x332   :  { %4330 = vtanh.f32 %v1170_v40 }
 0x333   :  { %4332 = vpow2.f32 %v3591_v42 }
 0x33c   :  { %v4331_v47 = vpop.eup %4330 }
 0x33d   :  { %v4333_v49 = vpop.eup %4332  ;;  %v1191_v2 = vmul.f32 %v4331_v47, %v4329_v46  ;;  %v3602_v46 = vld [vmem:[%s5672_s0 + $0x60] sm:$0xff] }
 0x33e   :  { %v1182_v3 = vadd.f32 1.0, %v4333_v49 }
 0x33f   :  { %v4997_v7 = vadd.f32 %v1191_v2, %v1190_v0 }
 0x340   :  { %4334 = vrcp.f32 %v1182_v3 }
 0x341   :  { %4336 = vtanh.f32 %v4997_v7 }
 0x34a   :  { %v4335_v14 = vpop.eup %4334 }
 0x34b   :  { %v4337_v19 = vpop.eup %4336 }
 0x34c   :  { %v1194_v25 = vmul.f32 %v4337_v19, %v4335_v14  ;;  %v3604_v19 = vld [vmem:[%s5672_s0 + $0x70] sm:$0xff] }
 0x34e   :  { %v1197_v45 = vpack.c.bf16 %v1194_v25, %v1194_v25 }
 0x350   :  { %3976 = vmatmul.mubr.bf16.vlgmr.msra.gmra.mrb[16].mxu0 %v1197_v45  ;;  %1544 = vmatmul.mubr.bf16.vlgmr.msra.gmra.mrb[16].mxu1 %v1197_v45 }
 0x351   :  { %1553 = vmatpush1.bf16.msra.mxu0 %v5003_v31  ;;  %1584 = vmatprep.mubr.bf16.mxu0 %v4418_v1 }
 0x352   :  { %1554 = vmatprep.subr.bf16.mxu0 %v5008_v48  ;;  %3995 = vmatprep.mubr.msk.bf16.mxu1 %vm4420_vm0, %v4419_v35 }
 0x353   :  { %3980 = vmatpush3.bf16.msra.mxu1 %v4202_v57 }
 0x354   :  { %3981 = vmatprep.subr.bf16.mxu1 %v4419_v35 }
 0x355   :  { %1555 = vmatpush1.bf16.msra.mxu0 %v5014_v9 }
 0x356   :  { %1556 = vmatprep.subr.bf16.mxu0 %v5021_v18 }
 0x357   :  { %3982 = vmatpush3.bf16.msra.mxu1 %v4203_v58 }
 0x358   :  { %3983 = vmatprep.subr.bf16.mxu1 %v4419_v35 }
 0x359   :  { %1557 = vmatpush1.bf16.msra.mxu0 %v5029_v24 }
 0x35a   :  { %1558 = vmatprep.subr.bf16.mxu0 %v5035_v26 }
 0x35b   :  { %3984 = vmatpush3.bf16.msra.mxu1 %v4204_v59 }
 0x35c   :  { %3985 = vmatprep.subr.bf16.mxu1 %v4419_v35 }
 0x35d   :  { %1559 = vmatpush1.bf16.msra.mxu0 %v5041_v29 }
 0x35e   :  { %1560 = vmatprep.subr.bf16.mxu0 %v5047_v50 }
 0x35f   :  { %3986 = vmatpush3.bf16.msra.mxu1 %v4205_v60 }
 0x360   :  { %3987 = vmatprep.subr.bf16.mxu1 %v4419_v35 }
 0x361   :  { %1561 = vmatpush1.bf16.msra.mxu0 %v5053_v51 }
 0x362   :  { %1562 = vmatprep.subr.bf16.mxu0 %v5059_v6 }
 0x363   :  { %3988 = vmatpush3.bf16.msra.mxu1 %v4206_v61 }
 0x364   :  { %3989 = vmatprep.subr.bf16.mxu1 %v4419_v35 }
 0x365   :  { %1563 = vmatpush1.bf16.msra.mxu0 %v5065_v52 }
 0x366   :  { %1564 = vmatprep.subr.bf16.mxu0 %v5071_v53 }
 0x367   :  { %3990 = vmatpush3.bf16.msra.mxu1 %v4207_v62 }
 0x368   :  { %3991 = vmatprep.subr.bf16.mxu1 %v4419_v35 }
 0x369   :  { %1565 = vmatpush1.bf16.msra.mxu0 %v5077_v54 }
 0x36a   :  { %1566 = vmatprep.subr.bf16.mxu0 %v5083_v55 }
 0x36b   :  { %3992 = vmatpush3.bf16.msra.mxu1 %v4208_v63 }
 0x36c   :  { %3993 = vmatprep.subr.bf16.mxu1 %v4419_v35 }
 0x36d   :  { %1567 = vmatpush1.bf16.msra.mxu0 %v5089_v56 }
 0x36e   :  { %1937 = vmatprep.subr.bf16.mxu0 %v4852_v10 }
 0x36f   :  { %3994 = vmatpush3.bf16.msra.mxu1 %v4209_v30 }
 0x370   :  { %1585 = vmatmul.mubr.bf16.vlgmr.msra.gmra.mrb[20].mxu0 %v1197_v45  ;;  %1978 = vmatprep.subr.bf16.mxu1 %v4974_v22  ;;  %v3605_v45 = vld [vmem:[%s5672_s0 + $0x78] sm:$0xff] }
 0x371   :  { %1938 = vmatpush1.bf16.msra.mxu0 %v4857_v11  ;;  %1969 = vmatprep.mubr.bf16.mxu0 %v4418_v1 }
 0x372   :  { %1939 = vmatprep.subr.bf16.mxu0 %v4868_v15 }
 0x375   :  { %1940 = vmatpush1.bf16.msra.mxu0 %v4873_v16 }
 0x376   :  { %1941 = vmatprep.subr.bf16.mxu0 %v4884_v20 }
 0x379   :  { %1942 = vmatpush1.bf16.msra.mxu0 %v4889_v23 }
 0x37a   :  { %1943 = vmatprep.subr.bf16.mxu0 %v4900_v27 }
 0x37d   :  { %1944 = vmatpush1.bf16.msra.mxu0 %v4905_v28 }
 0x37e   :  { %1945 = vmatprep.subr.bf16.mxu0 %v4916_v32 }
 0x381   :  { %1946 = vmatpush1.bf16.msra.mxu0 %v4921_v34 }
 0x382   :  { %1947 = vmatprep.subr.bf16.mxu0 %v4937_v5 }
 0x385   :  { %1948 = vmatpush1.bf16.msra.mxu0 %v4932_v4 }
 0x386   :  { %1949 = vmatprep.subr.bf16.mxu0 %v4942_v8 }
 0x389   :  { %1950 = vmatpush1.bf16.msra.mxu0 %v4953_v12 }
 0x38a   :  { %1951 = vmatprep.subr.bf16.mxu0 %v4959_v17 }
 0x38d   :  { %1952 = vmatpush1.bf16.msra.mxu0 %v4969_v21 }
 0x38e   :  { %3999 = vmatprep.subr.bf16.mxu0 %v4419_v35 }
 0x423   :  { %v1303_v33 = vpop.f32.mrb[16].mxu0  ;;  %v1545_v36 = vpop.f32.mrb[16].mxu1 }
 0x424   :  { %v1304_v37 = vadd.f32 %v4805_v13, %v1303_v33  ;;  %v3977_v38 = vpop.f32.mrb[17].mxu0  ;;  %v1547_v39 = vpop.f32.mrb[17].mxu1  ;;  %v1593_v13 = vadd.f32 %v3602_v46, %v1545_v36 }
 0x425   :  { %v1306_v40 = vpop.f32.mrb[18].mxu0  ;;  %v1549_v41 = vpop.f32.mrb[18].mxu1  ;;  %v1594_v47 = vadd.f32 %v3603_v44, %v1547_v39 }
 0x426   :  { %3601 = vst [vmem:[%s5675_s6 + $0x10] sm:$0xff] %v1304_v37  ;;  %v3978_v42 = vpop.f32.mrb[19].mxu0  ;;  %v1550_v43 = vpop.f32.mrb[19].mxu1  ;;  %v3638_v0 = vmul.f32 -1.442695, %v1593_v13  ;;  %v3651_v13 = vld [vmem:[%s5672_s0 + $0x80] sm:$0xff] }
 0x427   :  { %v3639_v49 = vmul.f32 -1.442695, %v1594_v47 }
 0x429   :  { %4338 = vpow2.f32 %v3639_v49 }
 0x42a   :  { %4340 = vpow2.f32 %v3638_v0 }
 0x433   :  { %v4339_v2 = vpop.eup %4338 }
 0x434   :  { %v4341_v3 = vpop.eup %4340  ;;  %v1607_v14 = vadd.f32 1.0, %v4339_v2 }
 0x435   :  { %v1606_v25 = vadd.f32 1.0, %v4341_v3 }
 0x436   :  { %4342 = vrcp.f32 %v1607_v14 }
 0x437   :  { %4344 = vrcp.f32 %v1606_v25 }
 0x440   :  { %v4343_v30 = vpop.eup %4342 }
 0x441   :  { %v4345_v33 = vpop.eup %4344  ;;  %v1616_v38 = vmul.f32 %v4343_v30, %v4997_v7 }
 0x443   :  { %v1586_v57 = vpop.f32.mrb[20].mxu0 }
 0x444   :  { %v1595_v58 = vadd.f32 %v3604_v19, %v1586_v57  ;;  %v1588_v59 = vpop.f32.mrb[21].mxu0 }
 0x445   :  { %v1596_v60 = vadd.f32 %v3605_v45, %v1588_v59  ;;  %v1590_v61 = vpop.f32.mrb[22].mxu0  ;;  %v3653_v45 = vld [vmem:[%s5672_s0 + $0x90] sm:$0xff] }
 0x446   :  { %v3640_v62 = vmul.f32 -1.442695, %v1595_v58  ;;  %v1591_v63 = vpop.f32.mrb[23].mxu0  ;;  %v3654_v58 = vld [vmem:[%s5672_s0 + $0x98] sm:$0xff] }
 0x447   :  { %4346 = vtanh.f32 %v1596_v60 }
 0x448   :  { %4348 = vpow2.f32 %v3640_v62 }
 0x451   :  { %v4347_v36 = vpop.eup %4346 }
 0x452   :  { %v4349_v37 = vpop.eup %4348  ;;  %v1617_v39 = vmul.f32 %v4347_v36, %v4345_v33 }
 0x453   :  { %v1608_v40 = vadd.f32 1.0, %v4349_v37 }
 0x454   :  { %v5160_v41 = vadd.f32 %v1617_v39, %v1616_v38 }
 0x455   :  { %4350 = vrcp.f32 %v1608_v40 }
 0x456   :  { %4352 = vtanh.f32 %v5160_v41 }
 0x45f   :  { %v4351_v42 = vpop.eup %4350 }
 0x460   :  { %v4353_v43 = vpop.eup %4352 }
 0x461   :  { %v1620_v44 = vmul.f32 %v4353_v43, %v4351_v42 }
 0x463   :  { %v1623_v46 = vpack.c.bf16 %v1620_v44, %v1620_v44 }
 0x465   :  { %3996 = vmatmul.mubr.bf16.vlgmr.msra.gmra.mrb[20].mxu1 %v1623_v46  ;;  %1970 = vmatmul.mubr.bf16.vlgmr.msra.gmra.mrb[24].mxu0 %v1623_v46 }
 0x466   :  { %1979 = vmatpush1.bf16.msra.mxu1 %v5003_v31  ;;  %2010 = vmatprep.mubr.bf16.mxu1 %v4418_v1 }
 0x467   :  { %1980 = vmatprep.subr.bf16.mxu1 %v5008_v48  ;;  %4015 = vmatprep.mubr.msk.bf16.mxu0 %vm4420_vm0, %v4419_v35 }
 0x46a   :  { %1981 = vmatpush1.bf16.msra.mxu1 %v5014_v9 }
 0x46b   :  { %1982 = vmatprep.subr.bf16.mxu1 %v5021_v18 }
 0x46e   :  { %1983 = vmatpush1.bf16.msra.mxu1 %v5029_v24 }
 0x46f   :  { %1984 = vmatprep.subr.bf16.mxu1 %v5035_v26 }
 0x472   :  { %1985 = vmatpush1.bf16.msra.mxu1 %v5041_v29 }
 0x473   :  { %1986 = vmatprep.subr.bf16.mxu1 %v5047_v50 }
 0x476   :  { %1987 = vmatpush1.bf16.msra.mxu1 %v5053_v51 }
 0x477   :  { %1988 = vmatprep.subr.bf16.mxu1 %v5059_v6 }
 0x47a   :  { %1989 = vmatpush1.bf16.msra.mxu1 %v5065_v52 }
 0x47b   :  { %1990 = vmatprep.subr.bf16.mxu1 %v5071_v53 }
 0x47e   :  { %1991 = vmatpush1.bf16.msra.mxu1 %v5077_v54 }
 0x47f   :  { %1992 = vmatprep.subr.bf16.mxu1 %v5083_v55 }
 0x482   :  { %1993 = vmatpush1.bf16.msra.mxu1 %v5089_v56 }
 0x483   :  { %2363 = vmatprep.subr.bf16.mxu1 %v4852_v10  ;;  %v4210_v10 = vld [vmem:[%s5671_s4] sm:$0xff]  }
 0x484   :  { %4000 = vmatpush3.bf16.msra.mxu0 %v4210_v10 }
 0x485   :  { %2011 = vmatmul.mubr.bf16.vlgmr.msra.gmra.mrb[24].mxu1 %v1623_v46  ;;  %4001 = vmatprep.subr.bf16.mxu0 %v4419_v35 }
 0x486   :  { %2364 = vmatpush1.bf16.msra.mxu1 %v4857_v11  ;;  %2395 = vmatprep.mubr.bf16.mxu1 %v4418_v1  ;;  %v4211_v11 = vld [vmem:[%s5671_s4 + $0x8] sm:$0xff]  }
 0x487   :  { %2365 = vmatprep.subr.bf16.mxu1 %v4868_v15  ;;  %v4212_v15 = vld [vmem:[%s5671_s4 + $0x10] sm:$0xff]  }
 0x488   :  { %4002 = vmatpush3.bf16.msra.mxu0 %v4211_v11 }
 0x489   :  { %4003 = vmatprep.subr.bf16.mxu0 %v4419_v35 }
 0x48a   :  { %2366 = vmatpush1.bf16.msra.mxu1 %v4873_v16  ;;  %v4213_v16 = vld [vmem:[%s5671_s4 + $0x18] sm:$0xff]  }
 0x48b   :  { %2367 = vmatprep.subr.bf16.mxu1 %v4884_v20  ;;  %v4214_v20 = vld [vmem:[%s5671_s4 + $0x20] sm:$0xff]  }
 0x48c   :  { %4004 = vmatpush3.bf16.msra.mxu0 %v4212_v15 }
 0x48d   :  { %4005 = vmatprep.subr.bf16.mxu0 %v4419_v35 }
 0x48e   :  { %2368 = vmatpush1.bf16.msra.mxu1 %v4889_v23  ;;  %v4215_v23 = vld [vmem:[%s5671_s4 + $0x28] sm:$0xff]  }
 0x48f   :  { %2369 = vmatprep.subr.bf16.mxu1 %v4900_v27  ;;  %v4216_v27 = vld [vmem:[%s5671_s4 + $0x30] sm:$0xff]  }
 0x490   :  { %4006 = vmatpush3.bf16.msra.mxu0 %v4213_v16  ;;  %v5361_v16 = vld [vmem:[%s5669_s1 + $0xa0] ss:$16 sps:$4 sm:$0xff]  }
 0x491   :  { %4007 = vmatprep.subr.bf16.mxu0 %v4419_v35 }
 0x492   :  { %2370 = vmatpush1.bf16.msra.mxu1 %v4905_v28  ;;  %v4217_v28 = vld [vmem:[%s5671_s4 + $0x38] sm:$0xff]  }
 0x493   :  { %2371 = vmatprep.subr.bf16.mxu1 %v4916_v32  ;;  %v5234_v32 = vld [vmem:[%s5674_s5] ss:$0 sm:$0xff] }
 0x494   :  { %4008 = vmatpush3.bf16.msra.mxu0 %v4214_v20  ;;  %v5366_v20 = vld [vmem:[%s5669_s1 + $0xa4] ss:$16 sps:$4 sm:$0xff]  }
 0x495   :  { %4009 = vmatprep.subr.bf16.mxu0 %v4419_v35 }
 0x496   :  { %2372 = vmatpush1.bf16.msra.mxu1 %v4921_v34 }
 0x497   :  { %2373 = vmatprep.subr.bf16.mxu1 %v4937_v5 }
 0x498   :  { %4010 = vmatpush3.bf16.msra.mxu0 %v4215_v23  ;;  %v5371_v23 = vld [vmem:[%s5669_s1 + $0xc4] ss:$16 sps:$4 sm:$0xff]  }
 0x499   :  { %4011 = vmatprep.subr.bf16.mxu0 %v4419_v35 }
 0x49a   :  { %2374 = vmatpush1.bf16.msra.mxu1 %v4932_v4 }
 0x49b   :  { %2375 = vmatprep.subr.bf16.mxu1 %v4942_v8 }
 0x49c   :  { %4012 = vmatpush3.bf16.msra.mxu0 %v4216_v27  ;;  %v4242_v27 = vld [vmem:[%s5671_s4 + $0x30] sm:$0xff]  }
 0x49d   :  { %4013 = vmatprep.subr.bf16.mxu0 %v4419_v35 }
 0x49e   :  { %2376 = vmatpush1.bf16.msra.mxu1 %v4953_v12 }
 0x49f   :  { %2377 = vmatprep.subr.bf16.mxu1 %v4959_v17 }
 0x4a0   :  { %4014 = vmatpush3.bf16.msra.mxu0 %v4217_v28  ;;  %v5382_v28 = vld [vmem:[%s5669_s1 + $0xc0] ss:$16 sps:$4 sm:$0xff]  }
 0x4a1   :  { %2404 = vmatprep.subr.bf16.mxu0 %v4974_v22  ;;  %v3652_v22 = vld [vmem:[%s5672_s0 + $0x88] sm:$0xff] }
 0x4a2   :  { %2378 = vmatpush1.bf16.msra.mxu1 %v4969_v21 }
 0x4a3   :  { %4019 = vmatprep.subr.bf16.mxu1 %v4419_v35 }
 0x538   :  { %v1729_v34 = vpop.f32.mrb[20].mxu1  ;;  %v1971_v4 = vpop.f32.mrb[24].mxu0 }
 0x539   :  { %v1730_v5 = vadd.f32 %v5234_v32, %v1729_v34  ;;  %v3997_v8 = vpop.f32.mrb[21].mxu1  ;;  %v1973_v12 = vpop.f32.mrb[25].mxu0  ;;  %v2019_v0 = vadd.f32 %v3651_v13, %v1971_v4  ;;  %v5388_v34 = vld [vmem:[%s5669_s1 + $0xe4] ss:$16 sps:$4 sm:$0xff]   ;;  %v4246_v4 = vld [vmem:[%s5671_s4 + $0x38] sm:$0xff]  }
 0x53a   :  { %v1732_v17 = vpop.f32.mrb[22].mxu1  ;;  %v1975_v21 = vpop.f32.mrb[26].mxu0  ;;  %v2020_v49 = vadd.f32 %v3652_v22, %v1973_v12  ;;  %v5403_v8 = vld [vmem:[%s5669_s1 + $0xc] ss:$16 sps:$4 sm:$0xff]  }
 0x53b   :  { %3650 = vst [vmem:[%s5675_s6 + $0x18] sm:$0xff] %v1730_v5  ;;  %v3998_v7 = vpop.f32.mrb[23].mxu1  ;;  %v1976_v47 = vpop.f32.mrb[27].mxu0  ;;  %v3687_v3 = vmul.f32 -1.442695, %v2019_v0 }
 0x53c   :  { %v3688_v2 = vmul.f32 -1.442695, %v2020_v49  ;;  %v5398_v5 = vld [vmem:[%s5669_s1 + $0xe0] ss:$16 sps:$4 sm:$0xff]  }
 0x53e   :  { %4354 = vpow2.f32 %v3688_v2  ;;  %v3701_v2 = vld [vmem:[%s5672_s0 + $0xa8] sm:$0xff] }
 0x53f   :  { %4356 = vpow2.f32 %v3687_v3  ;;  %v3700_v3 = vld [vmem:[%s5672_s0 + $0xa0] sm:$0xff] }
 0x548   :  { %v4355_v14 = vpop.eup %4354 }
 0x549   :  { %v4357_v19 = vpop.eup %4356  ;;  %v2033_v25 = vadd.f32 1.0, %v4355_v14 }
 0x54a   :  { %v2032_v57 = vadd.f32 1.0, %v4357_v19 }
 0x54b   :  { %4358 = vrcp.f32 %v2033_v25 }
 0x54c   :  { %4360 = vrcp.f32 %v2032_v57 }
 0x555   :  { %v4359_v36 = vpop.eup %4358 }
 0x556   :  { %v4361_v37 = vpop.eup %4360  ;;  %v2042_v40 = vmul.f32 %v4359_v36, %v5160_v41  ;;  %v4238_v41 = vld [vmem:[%s5671_s4 + $0x28] sm:$0xff]  }
 0x558   :  { %v2012_v59 = vpop.f32.mrb[24].mxu1 }
 0x559   :  { %v2021_v60 = vadd.f32 %v3653_v45, %v2012_v59  ;;  %v2014_v61 = vpop.f32.mrb[25].mxu1 }
 0x55a   :  { %v2022_v62 = vadd.f32 %v3654_v58, %v2014_v61  ;;  %v2016_v63 = vpop.f32.mrb[26].mxu1 }
 0x55b   :  { %v3689_v30 = vmul.f32 -1.442695, %v2021_v60  ;;  %v2017_v33 = vpop.f32.mrb[27].mxu1  ;;  %v3702_v60 = vld [vmem:[%s5672_s0 + $0xb0] sm:$0xff] }
 0x55c   :  { %4362 = vtanh.f32 %v2022_v62  ;;  %v3703_v62 = vld [vmem:[%s5672_s0 + $0xb8] sm:$0xff] }
 0x55d   :  { %4364 = vpow2.f32 %v3689_v30 }
 0x566   :  { %v4363_v38 = vpop.eup %4362 }
 0x567   :  { %v4365_v39 = vpop.eup %4364  ;;  %v2043_v42 = vmul.f32 %v4363_v38, %v4361_v37 }
 0x568   :  { %v2034_v43 = vadd.f32 1.0, %v4365_v39 }
 0x569   :  { %v5253_v44 = vadd.f32 %v2043_v42, %v2042_v40 }
 0x56a   :  { %4366 = vrcp.f32 %v2034_v43 }
 0x56b   :  { %4368 = vtanh.f32 %v5253_v44 }
 0x574   :  { %v4367_v46 = vpop.eup %4366 }
 0x575   :  { %v4369_v10 = vpop.eup %4368 }
 0x576   :  { %v2046_v11 = vmul.f32 %v4369_v10, %v4367_v46 }
 0x578   :  { %v2049_v15 = vpack.c.bf16 %v2046_v11, %v2046_v11 }
 0x57a   :  { %4016 = vmatmul.mubr.bf16.vlgmr.msra.gmra.mrb[28].mxu0 %v2049_v15  ;;  %2396 = vmatmul.mubr.bf16.vlgmr.msra.gmra.mrb[28].mxu1 %v2049_v15 }
 0x57b   :  { %2405 = vmatpush1.bf16.msra.mxu0 %v5003_v31  ;;  %2436 = vmatprep.mubr.bf16.mxu0 %v4418_v1  ;;  %v4218_v31 = vld [vmem:[%s5671_s4] sm:$0xff]  }
 0x57c   :  { %2406 = vmatprep.subr.bf16.mxu0 %v5008_v48  ;;  %4035 = vmatprep.mubr.msk.bf16.mxu1 %vm4420_vm0, %v4419_v35  ;;  %v5281_v48 = vld [vmem:[%s5669_s1 + $0x4] ss:$16 sps:$4 sm:$0xff]  }
 0x57d   :  { %4020 = vmatpush3.bf16.msra.mxu1 %v4218_v31 }
 0x57e   :  { %4021 = vmatprep.subr.bf16.mxu1 %v4419_v35 }
 0x57f   :  { %2407 = vmatpush1.bf16.msra.mxu0 %v5014_v9  ;;  %v5286_v9 = vld [vmem:[%s5669_s1] ss:$16 sps:$4 sm:$0xff]  }
 0x580   :  { %2408 = vmatprep.subr.bf16.mxu0 %v5021_v18  ;;  %v4222_v18 = vld [vmem:[%s5671_s4 + $0x8] sm:$0xff]  }
 0x581   :  { %4022 = vmatpush3.bf16.msra.mxu1 %v4222_v18 }
 0x582   :  { %4023 = vmatprep.subr.bf16.mxu1 %v4419_v35 }
 0x583   :  { %2409 = vmatpush1.bf16.msra.mxu0 %v5029_v24  ;;  %v5297_v24 = vld [vmem:[%s5669_s1 + $0x24] ss:$16 sps:$4 sm:$0xff]  }
 0x584   :  { %2410 = vmatprep.subr.bf16.mxu0 %v5035_v26  ;;  %v5302_v26 = vld [vmem:[%s5669_s1 + $0x20] ss:$16 sps:$4 sm:$0xff]  }
 0x587   :  { %2411 = vmatpush1.bf16.msra.mxu0 %v5041_v29  ;;  %v4226_v29 = vld [vmem:[%s5671_s4 + $0x10] sm:$0xff]  }
 0x588   :  { %2412 = vmatprep.subr.bf16.mxu0 %v5047_v50  ;;  %v5313_v50 = vld [vmem:[%s5669_s1 + $0x44] ss:$16 sps:$4 sm:$0xff]   ;;  %4024 = vmatpush3.bf16.msra.mxu1 %v4226_v29 }
 0x589   :  { %4025 = vmatprep.subr.bf16.mxu1 %v4419_v35 }
 0x58b   :  { %2413 = vmatpush1.bf16.msra.mxu0 %v5053_v51  ;;  %v5318_v51 = vld [vmem:[%s5669_s1 + $0x40] ss:$16 sps:$4 sm:$0xff]  }
 0x58c   :  { %2414 = vmatprep.subr.bf16.mxu0 %v5059_v6  ;;  %v4230_v6 = vld [vmem:[%s5671_s4 + $0x18] sm:$0xff]  }
 0x58d   :  { %4026 = vmatpush3.bf16.msra.mxu1 %v4230_v6 }
 0x58e   :  { %4027 = vmatprep.subr.bf16.mxu1 %v4419_v35 }
 0x58f   :  { %2415 = vmatpush1.bf16.msra.mxu0 %v5065_v52  ;;  %v5329_v52 = vld [vmem:[%s5669_s1 + $0x64] ss:$16 sps:$4 sm:$0xff]  }
 0x590   :  { %2416 = vmatprep.subr.bf16.mxu0 %v5071_v53  ;;  %v5334_v53 = vld [vmem:[%s5669_s1 + $0x60] ss:$16 sps:$4 sm:$0xff]  }
 0x593   :  { %2417 = vmatpush1.bf16.msra.mxu0 %v5077_v54  ;;  %v4234_v54 = vld [vmem:[%s5671_s4 + $0x20] sm:$0xff]  }
 0x594   :  { %2418 = vmatprep.subr.bf16.mxu0 %v5083_v55  ;;  %v5345_v55 = vld [vmem:[%s5669_s1 + $0x84] ss:$16 sps:$4 sm:$0xff]   ;;  %4028 = vmatpush3.bf16.msra.mxu1 %v4234_v54  ;;  %v5432_v54 = vld [vmem:[%s5669_s1 + $0x8] ss:$16 sps:$4 sm:$0xff]  }
 0x595   :  { %4029 = vmatprep.subr.bf16.mxu1 %v4419_v35 }
 0x597   :  { %2419 = vmatpush1.bf16.msra.mxu0 %v5089_v56  ;;  %v5350_v56 = vld [vmem:[%s5669_s1 + $0x80] ss:$16 sps:$4 sm:$0xff]  }
 0x598   :  { %2789 = vmatprep.subr.bf16.mxu0 %v5281_v48  ;;  %4030 = vmatpush3.bf16.msra.mxu1 %v4238_v41 }
 0x599   :  { %4031 = vmatprep.subr.bf16.mxu1 %v4419_v35 }
 0x59a   :  { %2437 = vmatmul.mubr.bf16.vlgmr.msra.gmra.mrb[32].mxu0 %v2049_v15 }
 0x59b   :  { %2821 = vmatprep.mubr.bf16.mxu0 %v4418_v1  ;;  %2790 = vmatpush1.bf16.msra.mxu0 %v5286_v9 }
 0x59c   :  { %2791 = vmatprep.subr.bf16.mxu0 %v5297_v24  ;;  %4032 = vmatpush3.bf16.msra.mxu1 %v4242_v27  ;;  %v5443_v27 = vld [vmem:[%s5669_s1 + $0x28] ss:$16 sps:$4 sm:$0xff]  }
 0x59d   :  { %4033 = vmatprep.subr.bf16.mxu1 %v4419_v35 }
 0x59f   :  { %2792 = vmatpush1.bf16.msra.mxu0 %v5302_v26 }
 0x5a0   :  { %2793 = vmatprep.subr.bf16.mxu0 %v5313_v50  ;;  %4034 = vmatpush3.bf16.msra.mxu1 %v4246_v4  ;;  %v5450_v4 = vld [vmem:[%s5669_s1 + $0x4c] ss:$16 sps:$4 sm:$0xff]  }
 0x5a1   :  { %2830 = vmatprep.subr.bf16.mxu1 %v5403_v8 }
 0x5a3   :  { %2794 = vmatpush1.bf16.msra.mxu0 %v5318_v51 }
 0x5a4   :  { %2795 = vmatprep.subr.bf16.mxu0 %v5329_v52 }
 0x5a7   :  { %2796 = vmatpush1.bf16.msra.mxu0 %v5334_v53 }
 0x5a8   :  { %2797 = vmatprep.subr.bf16.mxu0 %v5345_v55 }
 0x5ab   :  { %2798 = vmatpush1.bf16.msra.mxu0 %v5350_v56 }
 0x5ac   :  { %2799 = vmatprep.subr.bf16.mxu0 %v5366_v20 }
 0x5af   :  { %2800 = vmatpush1.bf16.msra.mxu0 %v5361_v16 }
 0x5b0   :  { %2801 = vmatprep.subr.bf16.mxu0 %v5371_v23 }
 0x5b3   :  { %2802 = vmatpush1.bf16.msra.mxu0 %v5382_v28 }
 0x5b4   :  { %2803 = vmatprep.subr.bf16.mxu0 %v5388_v34 }
 0x5b7   :  { %2804 = vmatpush1.bf16.msra.mxu0 %v5398_v5 }
 0x5b8   :  { %4039 = vmatprep.subr.bf16.mxu0 %v4419_v35 }
 0x64d   :  { %v2155_v12 = vpop.f32.mrb[28].mxu0  ;;  %v2397_v17 = vpop.f32.mrb[28].mxu1 }
 0x64e   :  { %v2156_v21 = vadd.f32 %v5234_v32, %v2155_v12  ;;  %v4017_v7 = vpop.f32.mrb[29].mxu0  ;;  %v2399_v47 = vpop.f32.mrb[29].mxu1  ;;  %v2445_v19 = vadd.f32 %v3700_v3, %v2397_v17  ;;  %v5458_v12 = vld [vmem:[%s5669_s1 + $0x48] ss:$16 sps:$4 sm:$0xff]   ;;  %v5464_v17 = vld [vmem:[%s5669_s1 + $0x6c] ss:$16 sps:$4 sm:$0xff]  }
 0x64f   :  { %v2158_v22 = vpop.f32.mrb[30].mxu0  ;;  %v2401_v13 = vpop.f32.mrb[30].mxu1  ;;  %v2446_v14 = vadd.f32 %v3701_v2, %v2399_v47  ;;  %v5476_v7 = vld [vmem:[%s5669_s1 + $0x8c] ss:$16 sps:$4 sm:$0xff]   ;;  %v5482_v47 = vld [vmem:[%s5669_s1 + $0x88] ss:$16 sps:$4 sm:$0xff]  }
 0x650   :  { %3699 = vst [vmem:[%s5675_s6 + $0x20] sm:$0xff] %v2156_v21  ;;  %v4018_v49 = vpop.f32.mrb[31].mxu0  ;;  %v2402_v0 = vpop.f32.mrb[31].mxu1  ;;  %v3736_v45 = vmul.f32 -1.442695, %v2445_v19  ;;  %v3750_v19 = vld [vmem:[%s5672_s0 + $0xc8] sm:$0xff] }
 0x651   :  { %v3737_v25 = vmul.f32 -1.442695, %v2446_v14  ;;  %v5470_v21 = vld [vmem:[%s5669_s1 + $0x68] ss:$16 sps:$4 sm:$0xff]   ;;  %v5488_v22 = vld [vmem:[%s5669_s1 + $0xac] ss:$16 sps:$4 sm:$0xff]  }
 0x652   :  { %v5494_v13 = vld [vmem:[%s5669_s1 + $0xa8] ss:$16 sps:$4 sm:$0xff]   ;;  %v5500_v49 = vld [vmem:[%s5669_s1 + $0xcc] ss:$16 sps:$4 sm:$0xff]  }
 0x653   :  { %4370 = vpow2.f32 %v3737_v25  ;;  %v5506_v0 = vld [vmem:[%s5669_s1 + $0xc8] ss:$16 sps:$4 sm:$0xff]   ;;  %v5512_v2 = vld [vmem:[%s5669_s1 + $0xec] ss:$16 sps:$4 sm:$0xff]  }
 0x654   :  { %4372 = vpow2.f32 %v3736_v45  ;;  %v5518_v3 = vld [vmem:[%s5669_s1 + $0xe8] ss:$16 sps:$4 sm:$0xff]  }
 0x65d   :  { %v4371_v57 = vpop.eup %4370 }
 0x65e   :  { %v4373_v58 = vpop.eup %4372  ;;  %v2459_v59 = vadd.f32 1.0, %v4371_v57 }
 0x65f   :  { %v2458_v61 = vadd.f32 1.0, %v4373_v58 }
 0x660   :  { %4374 = vrcp.f32 %v2459_v59 }
 0x661   :  { %4376 = vrcp.f32 %v2458_v61  ;;  %v3751_v61 = vld [vmem:[%s5672_s0 + $0xd0] sm:$0xff] }
 0x66a   :  { %v4375_v40 = vpop.eup %4374 }
 0x66b   :  { %v4377_v42 = vpop.eup %4376  ;;  %v2468_v10 = vmul.f32 %v4375_v40, %v5253_v44  ;;  %v5437_v44 = vld [vmem:[%s5669_s1 + $0x2c] ss:$16 sps:$4 sm:$0xff]  }
 0x66d   :  { %v2438_v63 = vpop.f32.mrb[32].mxu0 }
 0x66e   :  { %v2447_v30 = vadd.f32 %v3702_v60, %v2438_v63  ;;  %v2440_v33 = vpop.f32.mrb[33].mxu0  ;;  %v3752_v63 = vld [vmem:[%s5672_s0 + $0xd8] sm:$0xff] }
 0x66f   :  { %v2448_v36 = vadd.f32 %v3703_v62, %v2440_v33  ;;  %v2442_v37 = vpop.f32.mrb[34].mxu0 }
 0x670   :  { %v3738_v38 = vmul.f32 -1.442695, %v2447_v30  ;;  %v2443_v39 = vpop.f32.mrb[35].mxu0 }
 0x671   :  { %4378 = vtanh.f32 %v2448_v36 }
 0x672   :  { %4380 = vpow2.f32 %v3738_v38 }
 0x67b   :  { %v4379_v43 = vpop.eup %4378 }
 0x67c   :  { %v4381_v46 = vpop.eup %4380  ;;  %v2469_v11 = vmul.f32 %v4379_v43, %v4377_v42 }
 0x67d   :  { %v2460_v15 = vadd.f32 1.0, %v4381_v46 }
 0x67e   :  { %v5426_v31 = vadd.f32 %v2469_v11, %v2468_v10 }
 0x67f   :  { %4382 = vrcp.f32 %v2460_v15 }
 0x680   :  { %4384 = vtanh.f32 %v5426_v31 }
 0x689   :  { %v4383_v18 = vpop.eup %4382 }
 0x68a   :  { %v4385_v29 = vpop.eup %4384 }
 0x68b   :  { %v2472_v6 = vmul.f32 %v4385_v29, %v4383_v18 }
 0x68d   :  { %v2475_v41 = vpack.c.bf16 %v2472_v6, %v2472_v6 }
 0x68f   :  { %4036 = vmatmul.mubr.bf16.vlgmr.msra.gmra.mrb[32].mxu1 %v2475_v41  ;;  %2822 = vmatmul.mubr.bf16.vlgmr.msra.gmra.mrb[36].mxu0 %v2475_v41 }
 0x690   :  { %2831 = vmatpush1.bf16.msra.mxu1 %v5432_v54  ;;  %2862 = vmatprep.mubr.bf16.mxu1 %v4418_v1 }
 0x691   :  { %2832 = vmatprep.subr.bf16.mxu1 %v5437_v44  ;;  %4055 = vmatprep.mubr.msk.bf16.mxu0 %vm4420_vm0, %v4419_v35 }
 0x694   :  { %2833 = vmatpush1.bf16.msra.mxu1 %v5443_v27 }
 0x695   :  { %2834 = vmatprep.subr.bf16.mxu1 %v5450_v4 }
 0x698   :  { %2835 = vmatpush1.bf16.msra.mxu1 %v5458_v12 }
 0x699   :  { %2836 = vmatprep.subr.bf16.mxu1 %v5464_v17 }
 0x69c   :  { %2837 = vmatpush1.bf16.msra.mxu1 %v5470_v21 }
 0x69d   :  { %2838 = vmatprep.subr.bf16.mxu1 %v5476_v7 }
 0x6a0   :  { %2839 = vmatpush1.bf16.msra.mxu1 %v5482_v47 }
 0x6a1   :  { %2840 = vmatprep.subr.bf16.mxu1 %v5488_v22 }
 0x6a4   :  { %2841 = vmatpush1.bf16.msra.mxu1 %v5494_v13 }
 0x6a5   :  { %2842 = vmatprep.subr.bf16.mxu1 %v5500_v49 }
 0x6a8   :  { %2843 = vmatpush1.bf16.msra.mxu1 %v5506_v0 }
 0x6a9   :  { %2844 = vmatprep.subr.bf16.mxu1 %v5512_v2 }
 0x6ac   :  { %2845 = vmatpush1.bf16.msra.mxu1 %v5518_v3 }
 0x6ad   :  { %3215 = vmatprep.subr.bf16.mxu1 %v5281_v48  ;;  %v4274_v48 = vld [vmem:[%s5671_s4] sm:$0xff]  }
 0x6ae   :  { %4040 = vmatpush3.bf16.msra.mxu0 %v4274_v48 }
 0x6af   :  { %2863 = vmatmul.mubr.bf16.vlgmr.msra.gmra.mrb[36].mxu1 %v2475_v41  ;;  %4041 = vmatprep.subr.bf16.mxu0 %v4419_v35 }
 0x6b0   :  { %3216 = vmatpush1.bf16.msra.mxu1 %v5286_v9  ;;  %3247 = vmatprep.mubr.bf16.mxu1 %v4418_v1  ;;  %v4275_v9 = vld [vmem:[%s5671_s4 + $0x8] sm:$0xff]  }
 0x6b1   :  { %3217 = vmatprep.subr.bf16.mxu1 %v5297_v24  ;;  %v4276_v24 = vld [vmem:[%s5671_s4 + $0x10] sm:$0xff]  }
 0x6b2   :  { %4042 = vmatpush3.bf16.msra.mxu0 %v4275_v9 }
 0x6b3   :  { %4043 = vmatprep.subr.bf16.mxu0 %v4419_v35 }
 0x6b4   :  { %3218 = vmatpush1.bf16.msra.mxu1 %v5302_v26  ;;  %v4277_v26 = vld [vmem:[%s5671_s4 + $0x18] sm:$0xff]  }
 0x6b5   :  { %3219 = vmatprep.subr.bf16.mxu1 %v5313_v50  ;;  %v4278_v50 = vld [vmem:[%s5671_s4 + $0x20] sm:$0xff]  }
 0x6b6   :  { %4044 = vmatpush3.bf16.msra.mxu0 %v4276_v24 }
 0x6b7   :  { %4045 = vmatprep.subr.bf16.mxu0 %v4419_v35 }
 0x6b8   :  { %3220 = vmatpush1.bf16.msra.mxu1 %v5318_v51  ;;  %v4279_v51 = vld [vmem:[%s5671_s4 + $0x28] sm:$0xff]  }
 0x6b9   :  { %3221 = vmatprep.subr.bf16.mxu1 %v5329_v52  ;;  %v4280_v52 = vld [vmem:[%s5671_s4 + $0x30] sm:$0xff]  }
 0x6ba   :  { %4046 = vmatpush3.bf16.msra.mxu0 %v4277_v26  ;;  %v3798_v26 = vld [vmem:[%s5672_s0 + $0xe0] sm:$0xff] }
 0x6bb   :  { %4047 = vmatprep.subr.bf16.mxu0 %v4419_v35 }
 0x6bc   :  { %3222 = vmatpush1.bf16.msra.mxu1 %v5334_v53  ;;  %v4281_v53 = vld [vmem:[%s5671_s4 + $0x38] sm:$0xff]  }
 0x6bd   :  { %3223 = vmatprep.subr.bf16.mxu1 %v5345_v55 }
 0x6be   :  { %4048 = vmatpush3.bf16.msra.mxu0 %v4278_v50 }
 0x6bf   :  { %4049 = vmatprep.subr.bf16.mxu0 %v4419_v35 }
 0x6c0   :  { %3224 = vmatpush1.bf16.msra.mxu1 %v5350_v56 }
 0x6c1   :  { %3225 = vmatprep.subr.bf16.mxu1 %v5366_v20 }
 0x6c2   :  { %4050 = vmatpush3.bf16.msra.mxu0 %v4279_v51 }
 0x6c3   :  { %4051 = vmatprep.subr.bf16.mxu0 %v4419_v35 }
 0x6c4   :  { %3226 = vmatpush1.bf16.msra.mxu1 %v5361_v16 }
 0x6c5   :  { %3227 = vmatprep.subr.bf16.mxu1 %v5371_v23 }
 0x6c6   :  { %4052 = vmatpush3.bf16.msra.mxu0 %v4280_v52 }
 0x6c7   :  { %4053 = vmatprep.subr.bf16.mxu0 %v4419_v35 }
 0x6c8   :  { %3228 = vmatpush1.bf16.msra.mxu1 %v5382_v28 }
 0x6c9   :  { %3229 = vmatprep.subr.bf16.mxu1 %v5388_v34 }
 0x6ca   :  { %4054 = vmatpush3.bf16.msra.mxu0 %v4281_v53 }
 0x6cb   :  { %3256 = vmatprep.subr.bf16.mxu0 %v5403_v8  ;;  %v3749_v8 = vld [vmem:[%s5672_s0 + $0xc0] sm:$0xff] }
 0x6cc   :  { %3230 = vmatpush1.bf16.msra.mxu1 %v5398_v5 }
 0x6cd   :  { %4059 = vmatprep.subr.bf16.mxu1 %v4419_v35 }
 0x762   :  { %v2581_v55 = vpop.f32.mrb[32].mxu1  ;;  %v2823_v56 = vpop.f32.mrb[36].mxu0 }
 0x763   :  { %v2582_v16 = vadd.f32 %v5234_v32, %v2581_v55  ;;  %v4037_v20 = vpop.f32.mrb[33].mxu1  ;;  %v2825_v23 = vpop.f32.mrb[37].mxu0  ;;  %v2871_v32 = vadd.f32 %v3749_v8, %v2823_v56 }
 0x764   :  { %v2584_v28 = vpop.f32.mrb[34].mxu1  ;;  %v2827_v34 = vpop.f32.mrb[38].mxu0  ;;  %v2872_v25 = vadd.f32 %v3750_v19, %v2825_v23  ;;  %v3800_v20 = vld [vmem:[%s5672_s0 + $0xf0] sm:$0xff] }
 0x765   :  { %3748 = vst [vmem:[%s5675_s6 + $0x28] sm:$0xff] %v2582_v16  ;;  %v4038_v5 = vpop.f32.mrb[35].mxu1  ;;  %v2828_v14 = vpop.f32.mrb[39].mxu0  ;;  %v3785_v57 = vmul.f32 -1.442695, %v2871_v32  ;;  %v3801_v28 = vld [vmem:[%s5672_s0 + $0xf8] sm:$0xff] }
 0x766   :  { %v3786_v45 = vmul.f32 -1.442695, %v2872_v25 }
 0x768   :  { %4386 = vpow2.f32 %v3786_v45 }
 0x769   :  { %4388 = vpow2.f32 %v3785_v57 }
 0x772   :  { %v4387_v58 = vpop.eup %4386 }
 0x773   :  { %v4389_v59 = vpop.eup %4388  ;;  %v2885_v60 = vadd.f32 1.0, %v4387_v58 }
 0x774   :  { %v2884_v62 = vadd.f32 1.0, %v4389_v59 }
 0x775   :  { %4390 = vrcp.f32 %v2885_v60 }
 0x776   :  { %4392 = vrcp.f32 %v2884_v62 }
 0x77f   :  { %v4391_v42 = vpop.eup %4390 }
 0x780   :  { %v4393_v43 = vpop.eup %4392  ;;  %v2894_v11 = vmul.f32 %v4391_v42, %v5426_v31  ;;  %v4283_v31 = vld [vmem:[%s5671_s4 + $0x8] sm:$0xff]  }
 0x782   :  { %v2864_v30 = vpop.f32.mrb[36].mxu1 }
 0x783   :  { %v2873_v33 = vadd.f32 %v3751_v61, %v2864_v30  ;;  %v2866_v36 = vpop.f32.mrb[37].mxu1 }
 0x784   :  { %v2874_v37 = vadd.f32 %v3752_v63, %v2866_v36  ;;  %v2868_v38 = vpop.f32.mrb[38].mxu1 }
 0x785   :  { %v3787_v39 = vmul.f32 -1.442695, %v2873_v33  ;;  %v2869_v40 = vpop.f32.mrb[39].mxu1 }
 0x786   :  { %4394 = vtanh.f32 %v2874_v37 }
 0x787   :  { %4396 = vpow2.f32 %v3787_v39 }
 0x790   :  { %v4395_v46 = vpop.eup %4394 }
 0x791   :  { %v4397_v10 = vpop.eup %4396  ;;  %v2895_v15 = vmul.f32 %v4395_v46, %v4393_v43 }
 0x792   :  { %v2886_v18 = vadd.f32 1.0, %v4397_v10 }
 0x793   :  { %v5589_v29 = vadd.f32 %v2895_v15, %v2894_v11 }
 0x794   :  { %4398 = vrcp.f32 %v2886_v18 }
 0x795   :  { %4400 = vtanh.f32 %v5589_v29 }
 0x79e   :  { %v4399_v6 = vpop.eup %4398 }
 0x79f   :  { %v4401_v41 = vpop.eup %4400 }
 0x7a0   :  { %v2898_v48 = vmul.f32 %v4401_v41, %v4399_v6 }
 0x7a2   :  { %v2901_v9 = vpack.c.bf16 %v2898_v48, %v2898_v48 }
 0x7a4   :  { %4056 = vmatmul.mubr.bf16.vlgmr.msra.gmra.mrb[40].mxu0 %v2901_v9  ;;  %3248 = vmatmul.mubr.bf16.vlgmr.msra.gmra.mrb[40].mxu1 %v2901_v9 }
 0x7a5   :  { %3257 = vmatpush1.bf16.msra.mxu0 %v5432_v54  ;;  %3288 = vmatprep.mubr.bf16.mxu0 %v4418_v1  ;;  %v4282_v1 = vld [vmem:[%s5671_s4] sm:$0xff]   ;;  %v4284_v54 = vld [vmem:[%s5671_s4 + $0x10] sm:$0xff]  }
 0x7a6   :  { %3258 = vmatprep.subr.bf16.mxu0 %v5437_v44  ;;  %4075 = vmatprep.mubr.msk.bf16.mxu1 %vm4420_vm0, %v4419_v35  ;;  %v4285_v44 = vld [vmem:[%s5671_s4 + $0x18] sm:$0xff]  }
 0x7a7   :  { %4060 = vmatpush3.bf16.msra.mxu1 %v4282_v1 }
 0x7a8   :  { %4061 = vmatprep.subr.bf16.mxu1 %v4419_v35 }
 0x7a9   :  { %3259 = vmatpush1.bf16.msra.mxu0 %v5443_v27  ;;  %v4286_v27 = vld [vmem:[%s5671_s4 + $0x20] sm:$0xff]  }
 0x7aa   :  { %3260 = vmatprep.subr.bf16.mxu0 %v5450_v4  ;;  %v4287_v4 = vld [vmem:[%s5671_s4 + $0x28] sm:$0xff]  }
 0x7ab   :  { %4062 = vmatpush3.bf16.msra.mxu1 %v4283_v31 }
 0x7ac   :  { %4063 = vmatprep.subr.bf16.mxu1 %v4419_v35 }
 0x7ad   :  { %3261 = vmatpush1.bf16.msra.mxu0 %v5458_v12  ;;  %v4288_v12 = vld [vmem:[%s5671_s4 + $0x30] sm:$0xff]  }
 0x7ae   :  { %3262 = vmatprep.subr.bf16.mxu0 %v5464_v17  ;;  %v4289_v17 = vld [vmem:[%s5671_s4 + $0x38] sm:$0xff]  }
 0x7af   :  { %4064 = vmatpush3.bf16.msra.mxu1 %v4284_v54 }
 0x7b0   :  { %4065 = vmatprep.subr.bf16.mxu1 %v4419_v35 }
 0x7b1   :  { %3263 = vmatpush1.bf16.msra.mxu0 %v5470_v21  ;;  %v3788_v21 = vld [vmem:[%s5674_s5] ss:$0 sm:$0xff] }
 0x7b2   :  { %3264 = vmatprep.subr.bf16.mxu0 %v5476_v7 }
 0x7b3   :  { %4066 = vmatpush3.bf16.msra.mxu1 %v4285_v44 }
 0x7b4   :  { %4067 = vmatprep.subr.bf16.mxu1 %v4419_v35 }
 0x7b5   :  { %3265 = vmatpush1.bf16.msra.mxu0 %v5482_v47 }
 0x7b6   :  { %3266 = vmatprep.subr.bf16.mxu0 %v5488_v22 }
 0x7b7   :  { %4068 = vmatpush3.bf16.msra.mxu1 %v4286_v27 }
 0x7b8   :  { %4069 = vmatprep.subr.bf16.mxu1 %v4419_v35 }
 0x7b9   :  { %3267 = vmatpush1.bf16.msra.mxu0 %v5494_v13 }
 0x7ba   :  { %3268 = vmatprep.subr.bf16.mxu0 %v5500_v49 }
 0x7bb   :  { %4070 = vmatpush3.bf16.msra.mxu1 %v4287_v4 }
 0x7bc   :  { %4071 = vmatprep.subr.bf16.mxu1 %v4419_v35 }
 0x7bd   :  { %3269 = vmatpush1.bf16.msra.mxu0 %v5506_v0 }
 0x7be   :  { %3270 = vmatprep.subr.bf16.mxu0 %v5512_v2 }
 0x7bf   :  { %4072 = vmatpush3.bf16.msra.mxu1 %v4288_v12 }
 0x7c0   :  { %4073 = vmatprep.subr.bf16.mxu1 %v4419_v35  ;;  %v3799_v35 = vld [vmem:[%s5672_s0 + $0xe8] sm:$0xff] }
 0x7c1   :  { %3271 = vmatpush1.bf16.msra.mxu0 %v5518_v3 }
 0x7c3   :  { %4074 = vmatpush3.bf16.msra.mxu1 %v4289_v17 }
 0x7c4   :  { %3289 = vmatmul.mubr.bf16.vlgmr.msra.gmra.mrb[44].mxu0 %v2901_v9 }
 0x877   :  { %v3007_v7 = vpop.f32.mrb[40].mxu0  ;;  %v3249_v47 = vpop.f32.mrb[40].mxu1 }
 0x878   :  { %v3008_v22 = vadd.f32 %v3788_v21, %v3007_v7  ;;  %v4057_v13 = vpop.f32.mrb[41].mxu0  ;;  %v3251_v49 = vpop.f32.mrb[41].mxu1  ;;  %v3297_v51 = vadd.f32 %v3798_v26, %v3249_v47 }
 0x879   :  { %v3010_v0 = vpop.f32.mrb[42].mxu0  ;;  %v3253_v2 = vpop.f32.mrb[42].mxu1  ;;  %v3298_v50 = vadd.f32 %v3799_v35, %v3251_v49 }
 0x87a   :  { %3797 = vst [vmem:[%s5675_s6 + $0x30] sm:$0xff] %v3008_v22  ;;  %v4058_v3 = vpop.f32.mrb[43].mxu0  ;;  %v3254_v24 = vpop.f32.mrb[43].mxu1  ;;  %v3834_v53 = vmul.f32 -1.442695, %v3297_v51 }
 0x87b   :  { %v3835_v52 = vmul.f32 -1.442695, %v3298_v50 }
 0x87d   :  { %4402 = vpow2.f32 %v3835_v52 }
 0x87e   :  { %4404 = vpow2.f32 %v3834_v53 }
 0x887   :  { %v4403_v55 = vpop.eup %4402 }
 0x888   :  { %v4405_v56 = vpop.eup %4404  ;;  %v3311_v16 = vadd.f32 1.0, %v4403_v55 }
 0x889   :  { %v3310_v23 = vadd.f32 1.0, %v4405_v56 }
 0x88a   :  { %4406 = vrcp.f32 %v3311_v16 }
 0x88b   :  { %4408 = vrcp.f32 %v3310_v23 }
 0x894   :  { %v4407_v45 = vpop.eup %4406 }
 0x895   :  { %v4409_v57 = vpop.eup %4408  ;;  %v3320_v60 = vmul.f32 %v4407_v45, %v5589_v29 }
 0x897   :  { %v3290_v34 = vpop.f32.mrb[44].mxu0 }
 0x898   :  { %v3299_v5 = vadd.f32 %v3800_v20, %v3290_v34  ;;  %v3292_v14 = vpop.f32.mrb[45].mxu0 }
 0x899   :  { %v3300_v19 = vadd.f32 %v3801_v28, %v3292_v14  ;;  %v3294_v8 = vpop.f32.mrb[46].mxu0 }
 0x89a   :  { %v3836_v25 = vmul.f32 -1.442695, %v3299_v5  ;;  %v3295_v32 = vpop.f32.mrb[47].mxu0 }
 0x89b   :  { %4410 = vtanh.f32 %v3300_v19 }
 0x89c   :  { %4412 = vpow2.f32 %v3836_v25 }
 0x8a5   :  { %v4411_v58 = vpop.eup %4410 }
 0x8a6   :  { %v4413_v59 = vpop.eup %4412  ;;  %v3321_v61 = vmul.f32 %v4411_v58, %v4409_v57 }
 0x8a7   :  { %v3312_v62 = vadd.f32 1.0, %v4413_v59 }
 0x8a8   :  { %v3322_v63 = vadd.f32 %v3321_v61, %v3320_v60 }
 0x8a9   :  { %4414 = vrcp.f32 %v3312_v62 }
 0x8aa   :  { %4416 = vtanh.f32 %v3322_v63  ;;  %3447 = vst [vmem:[%s5676_s8] sm:$0xff] %v3322_v63 }
 0x8b3   :  { %v4415_v30 = vpop.eup %4414 }
 0x8b4   :  { %v4417_v33 = vpop.eup %4416 }
 0x8b5   :  { %v3324_v36 = vmul.f32 %v4417_v33, %v4415_v30 }
 0x8b7   :  { %v3327_v37 = vpack.c.bf16 %v3324_v36, %v3324_v36  ;;  %3445 = vst [vmem:[%s5677_s7] sm:$0xff] %v3324_v36 }
 0x8b9   :  { %4076 = vmatmul.mubr.bf16.vlgmr.msra.gmra.mrb[44].mxu1 %v3327_v37 }
 0x98c   :  { %v3433_v38 = vpop.f32.mrb[44].mxu1 }
 0x98d   :  { %v3434_v39 = vadd.f32 %v3788_v21, %v3433_v38  ;;  %v4077_v40 = vpop.f32.mrb[45].mxu1 }
 0x98e   :  { %v3436_v42 = vpop.f32.mrb[46].mxu1 }
 0x98f   :  { %3846 = vst [vmem:[%s5675_s6 + $0x38] sm:$0xff] %v3434_v39  ;;  %v4078_v43 = vpop.f32.mrb[47].mxu1 }

</bundles_post_ra>
